<compile_context>
chip_gen: v6e
topology: v6e:2x2x1
jax: 0.10.0
libtpu: 0.0.40
codegen_flags: <defaults>
</compile_context>

<pallas_src>
import math
import jax
import jax.numpy as jnp
from jax.experimental import pallas as pl
from jax.experimental.pallas import tpu as pltpu

# ---- model hyper-parameters (small, consistent with the module) -------------
D_MODEL = 32
N_HEADS = 4
SEQ = 8
BATCH = 2
N_LAYERS = 3          # total residual attention blocks
N_EXPOSED = 2         # last N_EXPOSED blocks are "exposed"
LN_EPS = 1e-5


# ----------------------------- kernel helpers --------------------------------
def _layer_norm(x, g, b):
    mu = jnp.mean(x, axis=-1, keepdims=True)
    var = jnp.mean((x - mu) ** 2, axis=-1, keepdims=True)
    return (x - mu) * jax.lax.rsqrt(var + LN_EPS) * g + b


# ------------------------- fused transformer kernel --------------------------
def _make_fused_kernel(N, L, D, n_heads, base):
    NL = N * L
    HD = D // n_heads
    scale = 1.0 / math.sqrt(HD)

    def kernel(cls_idx_ref, x_ref,
               ln1g, ln1b, wqkv, bqkv, wo, bo,
               ln2g, ln2b, w1, b1, w2, b2,
               x_out, cls_out, avg_out, xs):
        t = pl.program_id(0)

        # Layer 0: load the input activation into the resident f32 scratch.
        @pl.when(t == 0)
        def _():
            xs[...] = x_ref[...].astype(jnp.float32)

        x = xs[...].reshape(NL, D)                       # whole batch at once

        # ---- multi-head self-attention (pre-LN) ----
        xn = _layer_norm(x, ln1g[...], ln1b[...])
        qkv = jnp.dot(xn, wqkv[...],
                      preferred_element_type=jnp.float32) + bqkv[...]
        q = qkv[:, :D].reshape(N, L, D)
        k = qkv[:, D:2 * D].reshape(N, L, D)
        v = qkv[:, 2 * D:].reshape(N, L, D)

        heads = []
        for h in range(n_heads):                          # static, tiny loop
            sl = slice(h * HD, (h + 1) * HD)
            qh, kh, vh = q[..., sl], k[..., sl], v[..., sl]     # (N, L, HD)
            s = jnp.einsum('nqd,nkd->nqk', qh, kh,
                           preferred_element_type=jnp.float32) * scale
            s = s - jnp.max(s, axis=-1, keepdims=True)
            p = jnp.exp(s)
            p = p * pl.reciprocal(jnp.sum(p, axis=-1, keepdims=True),
                                  approx=True)
            heads.append(jnp.einsum('nqk,nkd->nqd', p, vh,
                                    preferred_element_type=jnp.float32))
        attn = jnp.concatenate(heads, axis=-1).reshape(NL, D)
        x = x + jnp.dot(attn, wo[...],
                        preferred_element_type=jnp.float32) + bo[...]

        # ---- MLP (pre-LN, QuickGELU) ----
        xn2 = _layer_norm(x, ln2g[...], ln2b[...])
        h1 = jnp.dot(xn2, w1[...], preferred_element_type=jnp.float32) + b1[...]
        h1 = h1 * jax.nn.sigmoid(1.702 * h1)
        x = x + jnp.dot(h1, w2[...], preferred_element_type=jnp.float32) + b2[...]

        x3 = x.reshape(N, L, D)
        xs[...] = x3                                     # keep resident in VMEM

        # Final layer: emit the transformed activation once.
        @pl.when(t == pl.num_programs(0) - 1)
        def _():
            x_out[...] = x3.astype(x_out.dtype)

        # Exposed layers: fused cls / avg extraction epilogue.
        @pl.when(t >= base)
        def _():
            # TODO(synk): PyTorch accumulates avg in float64; TPU has no f64,
            # accumulate in f32 (negligible at these sizes).
            total = jnp.sum(x3, axis=1)                               # (N, D)
            cls_rows = jnp.concatenate(
                [xs[n, pl.ds(cls_idx_ref[n], 1), :] for n in range(N)],
                axis=0)                                               # (N, D)
            avg = (total - cls_rows) * (1.0 / (L - 1))
            cls_out[...] = cls_rows.astype(cls_out.dtype)
            avg_out[...] = avg.astype(avg_out.dtype)

    return kernel


def run_exposed_transformer(x_nld, stacked, cls_idx, num_exposed, n_heads):
    N, L, D = x_nld.shape
    T = int(stacked[0].shape[0])
    assert 1 <= num_exposed <= T
    base = T - num_exposed

    kernel = _make_fused_kernel(N, L, D, n_heads, base)

    full_map = lambda t, idx: (0, 0, 0)
    layer_map = lambda t, idx: (t, 0, 0)
    exposed_map = lambda t, idx: (jnp.maximum(t - base, 0), 0, 0)

    in_specs = [pl.BlockSpec((N, L, D), full_map)]
    for w in stacked:
        in_specs.append(pl.BlockSpec((None,) + tuple(w.shape[1:]), layer_map))

    out_specs = [
        pl.BlockSpec((N, L, D), full_map),
        pl.BlockSpec((None, N, D), exposed_map),
        pl.BlockSpec((None, N, D), exposed_map),
    ]
    out_shape = (
        jax.ShapeDtypeStruct((N, L, D), x_nld.dtype),
        jax.ShapeDtypeStruct((num_exposed, N, D), x_nld.dtype),
        jax.ShapeDtypeStruct((num_exposed, N, D), x_nld.dtype),
    )
    grid_spec = pltpu.PrefetchScalarGridSpec(
        num_scalar_prefetch=1,
        grid=(T,),
        in_specs=in_specs,
        out_specs=out_specs,
        scratch_shapes=[pltpu.VMEM((N, L, D), jnp.float32)],
    )
    return pl.pallas_call(
        kernel,
        out_shape=out_shape,
        grid_spec=grid_spec,
        # Layer axis carries a data dependency -> must be "arbitrary".
        compiler_params=pltpu.CompilerParams(
            dimension_semantics=("arbitrary",)),
    )(cls_idx, x_nld, *stacked)


# --------------------------- module-level wrapper -----------------------------
def stack_layer_params(layer_params):
    """Pre-transpose nn.Linear weights to (in, out) once and stack per layer."""
    def to_kernel_layout(p):
        ln1g, ln1b, wqkv, bqkv, wo, bo, ln2g, ln2b, w1, b1, w2, b2 = p
        return (ln1g, ln1b, wqkv.T, bqkv, wo.T, bo,
                ln2g, ln2b, w1.T, b1, w2.T, b2)
    per_layer = [to_kernel_layout(p) for p in layer_params]
    return [jnp.stack(ws, axis=0) for ws in zip(*per_layer)]


def exposed_transformer_forward(x_lnd, layer_params, num_exposed,
                                cls_indices=None, n_heads=N_HEADS):
    """x_lnd: (L, N, D) exactly like the PyTorch module's input."""
    L, N, D = x_lnd.shape
    x_nld = jnp.transpose(x_lnd, (1, 0, 2))            # kernel layout (N, L, D)
    if cls_indices is None:
        # cls token at position 0; (sum - x[0]) / (L-1) == mean over tokens 1:
        idx = jnp.zeros((N,), jnp.int32)
    else:
        idx = cls_indices.astype(jnp.int32)
    stacked = stack_layer_params(layer_params)
    x_out_nld, cls_all, avg_all = run_exposed_transformer(
        x_nld, stacked, idx, num_exposed, n_heads)
    intermediate = [{'cls': cls_all[e], 'avg': avg_all[e]}
                    for e in range(num_exposed)]
    return jnp.transpose(x_out_nld, (1, 0, 2)), {'intermediate': intermediate}


# --------------------------- parameter initialization -------------------------
def init_layer_params(key, d):
    """Parameters in PyTorch conventions; the wrapper transposes Linear weights."""
    ks = jax.random.split(key, 4)
    s = 0.02
    ln1g = jnp.ones((1, d), jnp.float32)
    ln1b = jnp.zeros((1, d), jnp.float32)
    wqkv = s * jax.random.normal(ks[0], (3 * d, d), jnp.float32)   # in_proj_weight
    bqkv = s * jax.random.normal(ks[1], (1, 3 * d), jnp.float32)   # in_proj_bias
    wo = s * jax.random.normal(ks[2], (d, d), jnp.float32)         # out_proj.weight
    bo = jnp.zeros((1, d), jnp.float32)                            # out_proj.bias
    ln2g = jnp.ones((1, d), jnp.float32)
    ln2b = jnp.zeros((1, d), jnp.float32)
    w1 = s * jax.random.normal(ks[3], (4 * d, d), jnp.float32)     # mlp.c_fc
    b1 = jnp.zeros((1, 4 * d), jnp.float32)
    w2 = s * jax.random.normal(jax.random.fold_in(key, 7), (d, 4 * d), jnp.float32)  # mlp.c_proj
    b2 = jnp.zeros((1, d), jnp.float32)
    return (ln1g, ln1b, wqkv, bqkv, wo, bo, ln2g, ln2b, w1, b1, w2, b2)


if __name__ == "__main__":
    key = jax.random.PRNGKey(0)
    kx, kp = jax.random.split(key)
    x = jax.random.normal(kx, (SEQ, BATCH, D_MODEL), jnp.float32)   # (L, N, D)
    layer_keys = jax.random.split(kp, N_LAYERS)
    layers = [init_layer_params(k, D_MODEL) for k in layer_keys]

    # case 1: explicit cls_indices per batch element
    cls_indices = jnp.array([0, 3], jnp.int32)
    x_out, exposed = exposed_transformer_forward(x, layers, N_EXPOSED,
                                                 cls_indices=cls_indices)
    jax.block_until_ready(x_out)
    for entry in exposed['intermediate']:
        jax.block_until_ready(entry['cls'])
        jax.block_until_ready(entry['avg'])

    # case 2: cls_indices=None (cls token at position 0)
    x_out2, exposed2 = exposed_transformer_forward(x, layers, N_EXPOSED,
                                                   cls_indices=None)
    jax.block_until_ready(x_out2)
    for entry in exposed2['intermediate']:
        jax.block_until_ready(entry['cls'])
        jax.block_until_ready(entry['avg'])

    print("KERNEL_OK")
</pallas_src>

<mosaic_0001>
module attributes {stable_mosaic.version = 11 : i64} {
  func.func @kernel(%arg0: i32, %arg1: memref<2xi32, #tpu.memory_space<smem>>, %arg2: memref<2x8x32xf32, #tpu.memory_space<vmem>>, %arg3: memref<1x1x32xf32, #tpu.memory_space<vmem>>, %arg4: memref<1x1x32xf32, #tpu.memory_space<vmem>>, %arg5: memref<1x32x96xf32, #tpu.memory_space<vmem>>, %arg6: memref<1x1x96xf32, #tpu.memory_space<vmem>>, %arg7: memref<1x32x32xf32, #tpu.memory_space<vmem>>, %arg8: memref<1x1x32xf32, #tpu.memory_space<vmem>>, %arg9: memref<1x1x32xf32, #tpu.memory_space<vmem>>, %arg10: memref<1x1x32xf32, #tpu.memory_space<vmem>>, %arg11: memref<1x32x128xf32, #tpu.memory_space<vmem>>, %arg12: memref<1x1x128xf32, #tpu.memory_space<vmem>>, %arg13: memref<1x128x32xf32, #tpu.memory_space<vmem>>, %arg14: memref<1x1x32xf32, #tpu.memory_space<vmem>>, %arg15: memref<2x8x32xf32, #tpu.memory_space<vmem>>, %arg16: memref<1x2x32xf32, #tpu.memory_space<vmem>>, %arg17: memref<1x2x32xf32, #tpu.memory_space<vmem>>, %arg18: memref<2x8x32xf32, #tpu.memory_space<vmem>>) attributes {dimension_semantics = [#tpu.dimension_semantics<arbitrary>], iteration_bounds = array<i64: 3>, scalar_prefetch = 1 : i64, scratch_operands = 1 : i64, tpu.core_type = #tpu.core_type<tc>, window_params = [{pipeline_mode = #tpu.pipeline_mode<synchronous>, transform_indices = @transform_0, window_bounds = array<i64: 2, 8, 32>}, {transform_indices = @transform_1, window_bounds = array<i64: 1, 1, 32>}, {transform_indices = @transform_2, window_bounds = array<i64: 1, 1, 32>}, {transform_indices = @transform_3, window_bounds = array<i64: 1, 32, 96>}, {transform_indices = @transform_4, window_bounds = array<i64: 1, 1, 96>}, {transform_indices = @transform_5, window_bounds = array<i64: 1, 32, 32>}, {transform_indices = @transform_6, window_bounds = array<i64: 1, 1, 32>}, {transform_indices = @transform_7, window_bounds = array<i64: 1, 1, 32>}, {transform_indices = @transform_8, window_bounds = array<i64: 1, 1, 32>}, {transform_indices = @transform_9, window_bounds = array<i64: 1, 32, 128>}, {transform_indices = @transform_10, window_bounds = array<i64: 1, 1, 128>}, {transform_indices = @transform_11, window_bounds = array<i64: 1, 128, 32>}, {transform_indices = @transform_12, window_bounds = array<i64: 1, 1, 32>}, {pipeline_mode = #tpu.pipeline_mode<synchronous>, transform_indices = @transform_13, window_bounds = array<i64: 2, 8, 32>}, {transform_indices = @transform_14, window_bounds = array<i64: 1, 2, 32>}, {transform_indices = @transform_15, window_bounds = array<i64: 1, 2, 32>}]} {
    %c0_i32 = arith.constant 0 : i32
    %0 = arith.cmpi eq, %arg0, %c0_i32 : i32
    %1 = arith.extui %0 : i1 to i32
    %c0_i32_0 = arith.constant 0 : i32
    %2 = arith.cmpi ne, %1, %c0_i32_0 : i32
    scf.if %2 {
      %c0_79 = arith.constant 0 : index
      %c0_80 = arith.constant 0 : index
      %c0_81 = arith.constant 0 : index
      %179 = vector.load %arg2[%c0_79, %c0_80, %c0_81] : memref<2x8x32xf32, #tpu.memory_space<vmem>>, vector<2x8x32xf32>
      %c0_82 = arith.constant 0 : index
      %c0_83 = arith.constant 0 : index
      %c0_84 = arith.constant 0 : index
      %180 = vector.load %arg18[%c0_82, %c0_83, %c0_84] : memref<2x8x32xf32, #tpu.memory_space<vmem>>, vector<2x8x32xf32>
      tpu.vector_store %arg18[%c0_82, %c0_83, %c0_84], %179 {strides = array<i32>} : memref<2x8x32xf32, #tpu.memory_space<vmem>>, vector<2x8x32xf32>,
    } else {
    }
    %c0 = arith.constant 0 : index
    %c0_1 = arith.constant 0 : index
    %c0_2 = arith.constant 0 : index
    %3 = vector.load %arg18[%c0, %c0_1, %c0_2] : memref<2x8x32xf32, #tpu.memory_space<vmem>>, vector<2x8x32xf32>
    %4 = vector.shape_cast %3 : vector<2x8x32xf32> to vector<16x32xf32>
    %c0_3 = arith.constant 0 : index
    %c0_4 = arith.constant 0 : index
    %c0_5 = arith.constant 0 : index
    %5 = vector.load %arg3[%c0_3, %c0_4, %c0_5] : memref<1x1x32xf32, #tpu.memory_space<vmem>>, vector<1x1x32xf32>
    %6 = vector.shape_cast %5 : vector<1x1x32xf32> to vector<1x32xf32>
    %c0_6 = arith.constant 0 : index
    %c0_7 = arith.constant 0 : index
    %c0_8 = arith.constant 0 : index
    %7 = vector.load %arg4[%c0_6, %c0_7, %c0_8] : memref<1x1x32xf32, #tpu.memory_space<vmem>>, vector<1x1x32xf32>
    %8 = vector.shape_cast %7 : vector<1x1x32xf32> to vector<1x32xf32>
    %cst = arith.constant dense<0.000000e+00> : vector<16xf32>
    %9 = vector.multi_reduction <add>, %4, %cst [1] : vector<16x32xf32> to vector<16xf32>
    %10 = vector.shape_cast %9 : vector<16xf32> to vector<16x1xf32>
    %cst_9 = arith.constant 3.200000e+01 : f32
    %11 = vector.broadcast %cst_9 : f32 to vector<16x1xf32>
    %12 = arith.divf %10, %11 : vector<16x1xf32>
    %13 = vector.broadcast %12 : vector<16x1xf32> to vector<16x32xf32>
    %14 = arith.subf %4, %13 : vector<16x32xf32>
    %15 = arith.mulf %14, %14 : vector<16x32xf32>
    %cst_10 = arith.constant dense<0.000000e+00> : vector<16xf32>
    %16 = vector.multi_reduction <add>, %15, %cst_10 [1] : vector<16x32xf32> to vector<16xf32>
    %17 = vector.shape_cast %16 : vector<16xf32> to vector<16x1xf32>
    %cst_11 = arith.constant 3.200000e+01 : f32
    %18 = vector.broadcast %cst_11 : f32 to vector<16x1xf32>
    %19 = arith.divf %17, %18 : vector<16x1xf32>
    %20 = vector.broadcast %12 : vector<16x1xf32> to vector<16x32xf32>
    %21 = arith.subf %4, %20 : vector<16x32xf32>
    %cst_12 = arith.constant 9.99999974E-6 : f32
    %22 = vector.broadcast %cst_12 : f32 to vector<16x1xf32>
    %23 = arith.addf %19, %22 : vector<16x1xf32>
    %24 = math.rsqrt %23 : vector<16x1xf32>
    %25 = vector.broadcast %24 : vector<16x1xf32> to vector<16x32xf32>
    %26 = arith.mulf %21, %25 : vector<16x32xf32>
    %27 = vector.broadcast %6 : vector<1x32xf32> to vector<16x32xf32>
    %28 = arith.mulf %26, %27 : vector<16x32xf32>
    %29 = vector.broadcast %8 : vector<1x32xf32> to vector<16x32xf32>
    %30 = arith.addf %28, %29 : vector<16x32xf32>
    %c0_13 = arith.constant 0 : index
    %c0_14 = arith.constant 0 : index
    %c0_15 = arith.constant 0 : index
    %31 = vector.load %arg5[%c0_13, %c0_14, %c0_15] : memref<1x32x96xf32, #tpu.memory_space<vmem>>, vector<1x32x96xf32>
    %32 = vector.shape_cast %31 : vector<1x32x96xf32> to vector<32x96xf32>
    %cst_16 = arith.constant dense<0.000000e+00> : vector<16x96xf32>
    %33 = tpu.matmul %30, %32, %cst_16 {dimension_numbers = #tpu.dot_dimension_numbers<[1], [0], [0], [1], [0, 0, 1, 1], [], []>} : vector<16x32xf32>, vector<32x96xf32>, vector<16x96xf32> -> vector<16x96xf32>
    %c0_17 = arith.constant 0 : index
    %c0_18 = arith.constant 0 : index
    %c0_19 = arith.constant 0 : index
    %34 = vector.load %arg6[%c0_17, %c0_18, %c0_19] : memref<1x1x96xf32, #tpu.memory_space<vmem>>, vector<1x1x96xf32>
    %35 = vector.shape_cast %34 : vector<1x1x96xf32> to vector<1x96xf32>
    %36 = vector.broadcast %35 : vector<1x96xf32> to vector<16x96xf32>
    %37 = arith.addf %33, %36 : vector<16x96xf32>
    %38 = vector.extract_strided_slice %37 {offsets = [0, 0], sizes = [16, 32], strides = [1, 1]} : vector<16x96xf32> to vector<16x32xf32>
    %39 = vector.shape_cast %38 : vector<16x32xf32> to vector<2x8x32xf32>
    %40 = vector.extract_strided_slice %37 {offsets = [0, 32], sizes = [16, 32], strides = [1, 1]} : vector<16x96xf32> to vector<16x32xf32>
    %41 = vector.shape_cast %40 : vector<16x32xf32> to vector<2x8x32xf32>
    %42 = vector.extract_strided_slice %37 {offsets = [0, 64], sizes = [16, 32], strides = [1, 1]} : vector<16x96xf32> to vector<16x32xf32>
    %43 = vector.shape_cast %42 : vector<16x32xf32> to vector<2x8x32xf32>
    %44 = vector.extract_strided_slice %39 {offsets = [0, 0, 0], sizes = [2, 8, 8], strides = [1, 1, 1]} : vector<2x8x32xf32> to vector<2x8x8xf32>
    %45 = vector.extract_strided_slice %41 {offsets = [0, 0, 0], sizes = [2, 8, 8], strides = [1, 1, 1]} : vector<2x8x32xf32> to vector<2x8x8xf32>
    %46 = vector.extract_strided_slice %43 {offsets = [0, 0, 0], sizes = [2, 8, 8], strides = [1, 1, 1]} : vector<2x8x32xf32> to vector<2x8x8xf32>
    "tpu.trace_start"() <{level = 10 : i32, message = "nqd,nkd->nqk"}> : () -> ()
    %cst_20 = arith.constant dense<0.000000e+00> : vector<2x8x8xf32>
    %47 = tpu.matmul %44, %45, %cst_20 {dimension_numbers = #tpu.dot_dimension_numbers<[2], [2], [1], [1], [0, 0, 0, 1, 1, 1], [0], [0]>} : vector<2x8x8xf32>, vector<2x8x8xf32>, vector<2x8x8xf32> -> vector<2x8x8xf32>
    "tpu.trace_stop"() : () -> ()
    %cst_21 = arith.constant 0.353553385 : f32
    %48 = vector.broadcast %cst_21 : f32 to vector<2x8x8xf32>
    %49 = arith.mulf %47, %48 : vector<2x8x8xf32>
    %cst_22 = arith.constant dense<0xFF800000> : vector<2x8xf32>
    %50 = vector.multi_reduction <maximumf>, %49, %cst_22 [2] : vector<2x8x8xf32> to vector<2x8xf32>
    %51 = vector.shape_cast %50 : vector<2x8xf32> to vector<2x8x1xf32>
    %52 = vector.broadcast %51 : vector<2x8x1xf32> to vector<2x8x8xf32>
    %53 = arith.subf %49, %52 : vector<2x8x8xf32>
    %54 = math.exp %53 : vector<2x8x8xf32>
    %cst_23 = arith.constant dense<0.000000e+00> : vector<2x8xf32>
    %55 = vector.multi_reduction <add>, %54, %cst_23 [2] : vector<2x8x8xf32> to vector<2x8xf32>
    %56 = vector.shape_cast %55 : vector<2x8xf32> to vector<2x8x1xf32>
    %57 = tpu.reciprocal %56 {approx = true} : vector<2x8x1xf32> -> vector<2x8x1xf32>
    %58 = vector.broadcast %57 : vector<2x8x1xf32> to vector<2x8x8xf32>
    %59 = arith.mulf %54, %58 : vector<2x8x8xf32>
    "tpu.trace_start"() <{level = 10 : i32, message = "nqk,nkd->nqd"}> : () -> ()
    %cst_24 = arith.constant dense<0.000000e+00> : vector<2x8x8xf32>
    %60 = tpu.matmul %59, %46, %cst_24 {dimension_numbers = #tpu.dot_dimension_numbers<[2], [1], [1], [2], [0, 0, 0, 1, 1, 2], [0], [0]>} : vector<2x8x8xf32>, vector<2x8x8xf32>, vector<2x8x8xf32> -> vector<2x8x8xf32>
    "tpu.trace_stop"() : () -> ()
    %61 = vector.extract_strided_slice %39 {offsets = [0, 0, 8], sizes = [2, 8, 8], strides = [1, 1, 1]} : vector<2x8x32xf32> to vector<2x8x8xf32>
    %62 = vector.extract_strided_slice %41 {offsets = [0, 0, 8], sizes = [2, 8, 8], strides = [1, 1, 1]} : vector<2x8x32xf32> to vector<2x8x8xf32>
    %63 = vector.extract_strided_slice %43 {offsets = [0, 0, 8], sizes = [2, 8, 8], strides = [1, 1, 1]} : vector<2x8x32xf32> to vector<2x8x8xf32>
    "tpu.trace_start"() <{level = 10 : i32, message = "nqd,nkd->nqk"}> : () -> ()
    %cst_25 = arith.constant dense<0.000000e+00> : vector<2x8x8xf32>
    %64 = tpu.matmul %61, %62, %cst_25 {dimension_numbers = #tpu.dot_dimension_numbers<[2], [2], [1], [1], [0, 0, 0, 1, 1, 1], [0], [0]>} : vector<2x8x8xf32>, vector<2x8x8xf32>, vector<2x8x8xf32> -> vector<2x8x8xf32>
    "tpu.trace_stop"() : () -> ()
    %cst_26 = arith.constant 0.353553385 : f32
    %65 = vector.broadcast %cst_26 : f32 to vector<2x8x8xf32>
    %66 = arith.mulf %64, %65 : vector<2x8x8xf32>
    %cst_27 = arith.constant dense<0xFF800000> : vector<2x8xf32>
    %67 = vector.multi_reduction <maximumf>, %66, %cst_27 [2] : vector<2x8x8xf32> to vector<2x8xf32>
    %68 = vector.shape_cast %67 : vector<2x8xf32> to vector<2x8x1xf32>
    %69 = vector.broadcast %68 : vector<2x8x1xf32> to vector<2x8x8xf32>
    %70 = arith.subf %66, %69 : vector<2x8x8xf32>
    %71 = math.exp %70 : vector<2x8x8xf32>
    %cst_28 = arith.constant dense<0.000000e+00> : vector<2x8xf32>
    %72 = vector.multi_reduction <add>, %71, %cst_28 [2] : vector<2x8x8xf32> to vector<2x8xf32>
    %73 = vector.shape_cast %72 : vector<2x8xf32> to vector<2x8x1xf32>
    %74 = tpu.reciprocal %73 {approx = true} : vector<2x8x1xf32> -> vector<2x8x1xf32>
    %75 = vector.broadcast %74 : vector<2x8x1xf32> to vector<2x8x8xf32>
    %76 = arith.mulf %71, %75 : vector<2x8x8xf32>
    "tpu.trace_start"() <{level = 10 : i32, message = "nqk,nkd->nqd"}> : () -> ()
    %cst_29 = arith.constant dense<0.000000e+00> : vector<2x8x8xf32>
    %77 = tpu.matmul %76, %63, %cst_29 {dimension_numbers = #tpu.dot_dimension_numbers<[2], [1], [1], [2], [0, 0, 0, 1, 1, 2], [0], [0]>} : vector<2x8x8xf32>, vector<2x8x8xf32>, vector<2x8x8xf32> -> vector<2x8x8xf32>
    "tpu.trace_stop"() : () -> ()
    %78 = vector.extract_strided_slice %39 {offsets = [0, 0, 16], sizes = [2, 8, 8], strides = [1, 1, 1]} : vector<2x8x32xf32> to vector<2x8x8xf32>
    %79 = vector.extract_strided_slice %41 {offsets = [0, 0, 16], sizes = [2, 8, 8], strides = [1, 1, 1]} : vector<2x8x32xf32> to vector<2x8x8xf32>
    %80 = vector.extract_strided_slice %43 {offsets = [0, 0, 16], sizes = [2, 8, 8], strides = [1, 1, 1]} : vector<2x8x32xf32> to vector<2x8x8xf32>
    "tpu.trace_start"() <{level = 10 : i32, message = "nqd,nkd->nqk"}> : () -> ()
    %cst_30 = arith.constant dense<0.000000e+00> : vector<2x8x8xf32>
    %81 = tpu.matmul %78, %79, %cst_30 {dimension_numbers = #tpu.dot_dimension_numbers<[2], [2], [1], [1], [0, 0, 0, 1, 1, 1], [0], [0]>} : vector<2x8x8xf32>, vector<2x8x8xf32>, vector<2x8x8xf32> -> vector<2x8x8xf32>
    "tpu.trace_stop"() : () -> ()
    %cst_31 = arith.constant 0.353553385 : f32
    %82 = vector.broadcast %cst_31 : f32 to vector<2x8x8xf32>
    %83 = arith.mulf %81, %82 : vector<2x8x8xf32>
    %cst_32 = arith.constant dense<0xFF800000> : vector<2x8xf32>
    %84 = vector.multi_reduction <maximumf>, %83, %cst_32 [2] : vector<2x8x8xf32> to vector<2x8xf32>
    %85 = vector.shape_cast %84 : vector<2x8xf32> to vector<2x8x1xf32>
    %86 = vector.broadcast %85 : vector<2x8x1xf32> to vector<2x8x8xf32>
    %87 = arith.subf %83, %86 : vector<2x8x8xf32>
    %88 = math.exp %87 : vector<2x8x8xf32>
    %cst_33 = arith.constant dense<0.000000e+00> : vector<2x8xf32>
    %89 = vector.multi_reduction <add>, %88, %cst_33 [2] : vector<2x8x8xf32> to vector<2x8xf32>
    %90 = vector.shape_cast %89 : vector<2x8xf32> to vector<2x8x1xf32>
    %91 = tpu.reciprocal %90 {approx = true} : vector<2x8x1xf32> -> vector<2x8x1xf32>
    %92 = vector.broadcast %91 : vector<2x8x1xf32> to vector<2x8x8xf32>
    %93 = arith.mulf %88, %92 : vector<2x8x8xf32>
    "tpu.trace_start"() <{level = 10 : i32, message = "nqk,nkd->nqd"}> : () -> ()
    %cst_34 = arith.constant dense<0.000000e+00> : vector<2x8x8xf32>
    %94 = tpu.matmul %93, %80, %cst_34 {dimension_numbers = #tpu.dot_dimension_numbers<[2], [1], [1], [2], [0, 0, 0, 1, 1, 2], [0], [0]>} : vector<2x8x8xf32>, vector<2x8x8xf32>, vector<2x8x8xf32> -> vector<2x8x8xf32>
    "tpu.trace_stop"() : () -> ()
    %95 = vector.extract_strided_slice %39 {offsets = [0, 0, 24], sizes = [2, 8, 8], strides = [1, 1, 1]} : vector<2x8x32xf32> to vector<2x8x8xf32>
    %96 = vector.extract_strided_slice %41 {offsets = [0, 0, 24], sizes = [2, 8, 8], strides = [1, 1, 1]} : vector<2x8x32xf32> to vector<2x8x8xf32>
    %97 = vector.extract_strided_slice %43 {offsets = [0, 0, 24], sizes = [2, 8, 8], strides = [1, 1, 1]} : vector<2x8x32xf32> to vector<2x8x8xf32>
    "tpu.trace_start"() <{level = 10 : i32, message = "nqd,nkd->nqk"}> : () -> ()
    %cst_35 = arith.constant dense<0.000000e+00> : vector<2x8x8xf32>
    %98 = tpu.matmul %95, %96, %cst_35 {dimension_numbers = #tpu.dot_dimension_numbers<[2], [2], [1], [1], [0, 0, 0, 1, 1, 1], [0], [0]>} : vector<2x8x8xf32>, vector<2x8x8xf32>, vector<2x8x8xf32> -> vector<2x8x8xf32>
    "tpu.trace_stop"() : () -> ()
    %cst_36 = arith.constant 0.353553385 : f32
    %99 = vector.broadcast %cst_36 : f32 to vector<2x8x8xf32>
    %100 = arith.mulf %98, %99 : vector<2x8x8xf32>
    %cst_37 = arith.constant dense<0xFF800000> : vector<2x8xf32>
    %101 = vector.multi_reduction <maximumf>, %100, %cst_37 [2] : vector<2x8x8xf32> to vector<2x8xf32>
    %102 = vector.shape_cast %101 : vector<2x8xf32> to vector<2x8x1xf32>
    %103 = vector.broadcast %102 : vector<2x8x1xf32> to vector<2x8x8xf32>
    %104 = arith.subf %100, %103 : vector<2x8x8xf32>
    %105 = math.exp %104 : vector<2x8x8xf32>
    %cst_38 = arith.constant dense<0.000000e+00> : vector<2x8xf32>
    %106 = vector.multi_reduction <add>, %105, %cst_38 [2] : vector<2x8x8xf32> to vector<2x8xf32>
    %107 = vector.shape_cast %106 : vector<2x8xf32> to vector<2x8x1xf32>
    %108 = tpu.reciprocal %107 {approx = true} : vector<2x8x1xf32> -> vector<2x8x1xf32>
    %109 = vector.broadcast %108 : vector<2x8x1xf32> to vector<2x8x8xf32>
    %110 = arith.mulf %105, %109 : vector<2x8x8xf32>
    "tpu.trace_start"() <{level = 10 : i32, message = "nqk,nkd->nqd"}> : () -> ()
    %cst_39 = arith.constant dense<0.000000e+00> : vector<2x8x8xf32>
    %111 = tpu.matmul %110, %97, %cst_39 {dimension_numbers = #tpu.dot_dimension_numbers<[2], [1], [1], [2], [0, 0, 0, 1, 1, 2], [0], [0]>} : vector<2x8x8xf32>, vector<2x8x8xf32>, vector<2x8x8xf32> -> vector<2x8x8xf32>
    "tpu.trace_stop"() : () -> ()
    %112 = tpu.concatenate %60, %77, %94, %111 in 2 : vector<2x8x8xf32>, vector<2x8x8xf32>, vector<2x8x8xf32>, vector<2x8x8xf32> -> vector<2x8x32xf32>
    %113 = vector.shape_cast %112 : vector<2x8x32xf32> to vector<16x32xf32>
    %c0_40 = arith.constant 0 : index
    %c0_41 = arith.constant 0 : index
    %c0_42 = arith.constant 0 : index
    %114 = vector.load %arg7[%c0_40, %c0_41, %c0_42] : memref<1x32x32xf32, #tpu.memory_space<vmem>>, vector<1x32x32xf32>
    %115 = vector.shape_cast %114 : vector<1x32x32xf32> to vector<32x32xf32>
    %cst_43 = arith.constant dense<0.000000e+00> : vector<16x32xf32>
    %116 = tpu.matmul %113, %115, %cst_43 {dimension_numbers = #tpu.dot_dimension_numbers<[1], [0], [0], [1], [0, 0, 1, 1], [], []>} : vector<16x32xf32>, vector<32x32xf32>, vector<16x32xf32> -> vector<16x32xf32>
    %117 = arith.addf %4, %116 : vector<16x32xf32>
    %c0_44 = arith.constant 0 : index
    %c0_45 = arith.constant 0 : index
    %c0_46 = arith.constant 0 : index
    %118 = vector.load %arg8[%c0_44, %c0_45, %c0_46] : memref<1x1x32xf32, #tpu.memory_space<vmem>>, vector<1x1x32xf32>
    %119 = vector.shape_cast %118 : vector<1x1x32xf32> to vector<1x32xf32>
    %120 = vector.broadcast %119 : vector<1x32xf32> to vector<16x32xf32>
    %121 = arith.addf %117, %120 : vector<16x32xf32>
    %c0_47 = arith.constant 0 : index
    %c0_48 = arith.constant 0 : index
    %c0_49 = arith.constant 0 : index
    %122 = vector.load %arg9[%c0_47, %c0_48, %c0_49] : memref<1x1x32xf32, #tpu.memory_space<vmem>>, vector<1x1x32xf32>
    %123 = vector.shape_cast %122 : vector<1x1x32xf32> to vector<1x32xf32>
    %c0_50 = arith.constant 0 : index
    %c0_51 = arith.constant 0 : index
    %c0_52 = arith.constant 0 : index
    %124 = vector.load %arg10[%c0_50, %c0_51, %c0_52] : memref<1x1x32xf32, #tpu.memory_space<vmem>>, vector<1x1x32xf32>
    %125 = vector.shape_cast %124 : vector<1x1x32xf32> to vector<1x32xf32>
    %cst_53 = arith.constant dense<0.000000e+00> : vector<16xf32>
    %126 = vector.multi_reduction <add>, %121, %cst_53 [1] : vector<16x32xf32> to vector<16xf32>
    %127 = vector.shape_cast %126 : vector<16xf32> to vector<16x1xf32>
    %cst_54 = arith.constant 3.200000e+01 : f32
    %128 = vector.broadcast %cst_54 : f32 to vector<16x1xf32>
    %129 = arith.divf %127, %128 : vector<16x1xf32>
    %130 = vector.broadcast %129 : vector<16x1xf32> to vector<16x32xf32>
    %131 = arith.subf %121, %130 : vector<16x32xf32>
    %132 = arith.mulf %131, %131 : vector<16x32xf32>
    %cst_55 = arith.constant dense<0.000000e+00> : vector<16xf32>
    %133 = vector.multi_reduction <add>, %132, %cst_55 [1] : vector<16x32xf32> to vector<16xf32>
    %134 = vector.shape_cast %133 : vector<16xf32> to vector<16x1xf32>
    %cst_56 = arith.constant 3.200000e+01 : f32
    %135 = vector.broadcast %cst_56 : f32 to vector<16x1xf32>
    %136 = arith.divf %134, %135 : vector<16x1xf32>
    %137 = vector.broadcast %129 : vector<16x1xf32> to vector<16x32xf32>
    %138 = arith.subf %121, %137 : vector<16x32xf32>
    %cst_57 = arith.constant 9.99999974E-6 : f32
    %139 = vector.broadcast %cst_57 : f32 to vector<16x1xf32>
    %140 = arith.addf %136, %139 : vector<16x1xf32>
    %141 = math.rsqrt %140 : vector<16x1xf32>
    %142 = vector.broadcast %141 : vector<16x1xf32> to vector<16x32xf32>
    %143 = arith.mulf %138, %142 : vector<16x32xf32>
    %144 = vector.broadcast %123 : vector<1x32xf32> to vector<16x32xf32>
    %145 = arith.mulf %143, %144 : vector<16x32xf32>
    %146 = vector.broadcast %125 : vector<1x32xf32> to vector<16x32xf32>
    %147 = arith.addf %145, %146 : vector<16x32xf32>
    %c0_58 = arith.constant 0 : index
    %c0_59 = arith.constant 0 : index
    %c0_60 = arith.constant 0 : index
    %148 = vector.load %arg11[%c0_58, %c0_59, %c0_60] : memref<1x32x128xf32, #tpu.memory_space<vmem>>, vector<1x32x128xf32>
    %149 = vector.shape_cast %148 : vector<1x32x128xf32> to vector<32x128xf32>
    %cst_61 = arith.constant dense<0.000000e+00> : vector<16x128xf32>
    %150 = tpu.matmul %147, %149, %cst_61 {dimension_numbers = #tpu.dot_dimension_numbers<[1], [0], [0], [1], [0, 0, 1, 1], [], []>} : vector<16x32xf32>, vector<32x128xf32>, vector<16x128xf32> -> vector<16x128xf32>
    %c0_62 = arith.constant 0 : index
    %c0_63 = arith.constant 0 : index
    %c0_64 = arith.constant 0 : index
    %151 = vector.load %arg12[%c0_62, %c0_63, %c0_64] : memref<1x1x128xf32, #tpu.memory_space<vmem>>, vector<1x1x128xf32>
    %152 = vector.shape_cast %151 : vector<1x1x128xf32> to vector<1x128xf32>
    %153 = vector.broadcast %152 : vector<1x128xf32> to vector<16x128xf32>
    %154 = arith.addf %150, %153 : vector<16x128xf32>
    %cst_65 = arith.constant 1.702000e+00 : f32
    %155 = vector.broadcast %cst_65 : f32 to vector<16x128xf32>
    %156 = arith.mulf %155, %154 : vector<16x128xf32>
    %157 = arith.negf %156 : vector<16x128xf32>
    %158 = math.exp %157 : vector<16x128xf32>
    %cst_66 = arith.constant 1.000000e+00 : f32
    %159 = vector.broadcast %cst_66 : f32 to vector<16x128xf32>
    %160 = arith.addf %159, %158 : vector<16x128xf32>
    %161 = arith.divf %159, %160 : vector<16x128xf32>
    %162 = arith.mulf %154, %161 : vector<16x128xf32>
    %c0_67 = arith.constant 0 : index
    %c0_68 = arith.constant 0 : index
    %c0_69 = arith.constant 0 : index
    %163 = vector.load %arg13[%c0_67, %c0_68, %c0_69] : memref<1x128x32xf32, #tpu.memory_space<vmem>>, vector<1x128x32xf32>
    %164 = vector.shape_cast %163 : vector<1x128x32xf32> to vector<128x32xf32>
    %cst_70 = arith.constant dense<0.000000e+00> : vector<16x32xf32>
    %165 = tpu.matmul %162, %164, %cst_70 {dimension_numbers = #tpu.dot_dimension_numbers<[1], [0], [0], [1], [0, 0, 1, 1], [], []>} : vector<16x128xf32>, vector<128x32xf32>, vector<16x32xf32> -> vector<16x32xf32>
    %166 = arith.addf %121, %165 : vector<16x32xf32>
    %c0_71 = arith.constant 0 : index
    %c0_72 = arith.constant 0 : index
    %c0_73 = arith.constant 0 : index
    %167 = vector.load %arg14[%c0_71, %c0_72, %c0_73] : memref<1x1x32xf32, #tpu.memory_space<vmem>>, vector<1x1x32xf32>
    %168 = vector.shape_cast %167 : vector<1x1x32xf32> to vector<1x32xf32>
    %169 = vector.broadcast %168 : vector<1x32xf32> to vector<16x32xf32>
    %170 = arith.addf %166, %169 : vector<16x32xf32>
    %171 = vector.shape_cast %170 : vector<16x32xf32> to vector<2x8x32xf32>
    %c0_74 = arith.constant 0 : index
    %c0_75 = arith.constant 0 : index
    %c0_76 = arith.constant 0 : index
    %172 = vector.load %arg18[%c0_74, %c0_75, %c0_76] : memref<2x8x32xf32, #tpu.memory_space<vmem>>, vector<2x8x32xf32>
    tpu.vector_store %arg18[%c0_74, %c0_75, %c0_76], %171 {strides = array<i32>} : memref<2x8x32xf32, #tpu.memory_space<vmem>>, vector<2x8x32xf32>,
    %c2_i32 = arith.constant 2 : i32
    %173 = arith.cmpi eq, %arg0, %c2_i32 : i32
    %174 = arith.extui %173 : i1 to i32
    %c0_i32_77 = arith.constant 0 : i32
    %175 = arith.cmpi ne, %174, %c0_i32_77 : i32
    scf.if %175 {
      %c0_79 = arith.constant 0 : index
      %c0_80 = arith.constant 0 : index
      %c0_81 = arith.constant 0 : index
      %179 = vector.load %arg15[%c0_79, %c0_80, %c0_81] : memref<2x8x32xf32, #tpu.memory_space<vmem>>, vector<2x8x32xf32>
      tpu.vector_store %arg15[%c0_79, %c0_80, %c0_81], %171 {strides = array<i32>} : memref<2x8x32xf32, #tpu.memory_space<vmem>>, vector<2x8x32xf32>,
    } else {
    }
    %c1_i32 = arith.constant 1 : i32
    %176 = arith.cmpi sge, %arg0, %c1_i32 : i32
    %177 = arith.extui %176 : i1 to i32
    %c0_i32_78 = arith.constant 0 : i32
    %178 = arith.cmpi ne, %177, %c0_i32_78 : i32
    scf.if %178 {
      %cst_79 = arith.constant dense<0.000000e+00> : vector<2x32xf32>
      %179 = vector.multi_reduction <add>, %171, %cst_79 [1] : vector<2x8x32xf32> to vector<2x32xf32>
      %c0_80 = arith.constant 0 : index
      %180 = memref.load %arg1[%c0_80] : memref<2xi32, #tpu.memory_space<smem>>
      %c0_81 = arith.constant 0 : index
      %181 = arith.index_cast %180 : i32 to index
      %c0_82 = arith.constant 0 : index
      %182 = vector.load %arg18[%c0_81, %181, %c0_82] : memref<2x8x32xf32, #tpu.memory_space<vmem>>, vector<1x1x32xf32>
      %183 = vector.shape_cast %182 : vector<1x1x32xf32> to vector<1x32xf32>
      %c1 = arith.constant 1 : index
      %184 = memref.load %arg1[%c1] : memref<2xi32, #tpu.memory_space<smem>>
      %c1_83 = arith.constant 1 : index
      %185 = arith.index_cast %184 : i32 to index
      %c0_84 = arith.constant 0 : index
      %186 = vector.load %arg18[%c1_83, %185, %c0_84] : memref<2x8x32xf32, #tpu.memory_space<vmem>>, vector<1x1x32xf32>
      %187 = vector.shape_cast %186 : vector<1x1x32xf32> to vector<1x32xf32>
      %188 = tpu.concatenate %183, %187 in 0 : vector<1x32xf32>, vector<1x32xf32> -> vector<2x32xf32>
      %189 = arith.subf %179, %188 : vector<2x32xf32>
      %cst_85 = arith.constant 0.142857149 : f32
      %190 = vector.broadcast %cst_85 : f32 to vector<2x32xf32>
      %191 = arith.mulf %189, %190 : vector<2x32xf32>
      %c0_86 = arith.constant 0 : index
      %c0_87 = arith.constant 0 : index
      %c0_88 = arith.constant 0 : index
      %192 = vector.load %arg16[%c0_86, %c0_87, %c0_88] : memref<1x2x32xf32, #tpu.memory_space<vmem>>, vector<1x2x32xf32>
      %193 = vector.shape_cast %192 : vector<1x2x32xf32> to vector<2x32xf32>
      %194 = vector.shape_cast %188 : vector<2x32xf32> to vector<1x2x32xf32>
      tpu.vector_store %arg16[%c0_86, %c0_87, %c0_88], %194 {strides = array<i32>} : memref<1x2x32xf32, #tpu.memory_space<vmem>>, vector<1x2x32xf32>,
      %c0_89 = arith.constant 0 : index
      %c0_90 = arith.constant 0 : index
      %c0_91 = arith.constant 0 : index
      %195 = vector.load %arg17[%c0_89, %c0_90, %c0_91] : memref<1x2x32xf32, #tpu.memory_space<vmem>>, vector<1x2x32xf32>
      %196 = vector.shape_cast %195 : vector<1x2x32xf32> to vector<2x32xf32>
      %197 = vector.shape_cast %191 : vector<2x32xf32> to vector<1x2x32xf32>
      tpu.vector_store %arg17[%c0_89, %c0_90, %c0_91], %197 {strides = array<i32>} : memref<1x2x32xf32, #tpu.memory_space<vmem>>, vector<1x2x32xf32>,
    } else {
    }
    return
  }
  func.func @transform_0(%arg0: i32, %arg1: memref<2xi32, #tpu.memory_space<smem>>) -> (i32, i32, i32) {
    %c0_i32 = arith.constant 0 : i32
    %c0_i32_0 = arith.constant 0 : i32
    %c0_i32_1 = arith.constant 0 : i32
    %c0_i32_2 = arith.constant 0 : i32
    return %c0_i32, %c0_i32_0, %c0_i32_1 : i32, i32, i32
  }
  func.func @transform_1(%arg0: i32, %arg1: memref<2xi32, #tpu.memory_space<smem>>) -> (i32, i32, i32) {
    %c0_i32 = arith.constant 0 : i32
    %c0_i32_0 = arith.constant 0 : i32
    %c0_i32_1 = arith.constant 0 : i32
    return %arg0, %c0_i32, %c0_i32_0 : i32, i32, i32
  }
  func.func @transform_2(%arg0: i32, %arg1: memref<2xi32, #tpu.memory_space<smem>>) -> (i32, i32, i32) {
    %c0_i32 = arith.constant 0 : i32
    %c0_i32_0 = arith.constant 0 : i32
    %c0_i32_1 = arith.constant 0 : i32
    return %arg0, %c0_i32, %c0_i32_0 : i32, i32, i32
  }
  func.func @transform_3(%arg0: i32, %arg1: memref<2xi32, #tpu.memory_space<smem>>) -> (i32, i32, i32) {
    %c0_i32 = arith.constant 0 : i32
    %c0_i32_0 = arith.constant 0 : i32
    %c0_i32_1 = arith.constant 0 : i32
    return %arg0, %c0_i32, %c0_i32_0 : i32, i32, i32
  }
  func.func @transform_4(%arg0: i32, %arg1: memref<2xi32, #tpu.memory_space<smem>>) -> (i32, i32, i32) {
    %c0_i32 = arith.constant 0 : i32
    %c0_i32_0 = arith.constant 0 : i32
    %c0_i32_1 = arith.constant 0 : i32
    return %arg0, %c0_i32, %c0_i32_0 : i32, i32, i32
  }
  func.func @transform_5(%arg0: i32, %arg1: memref<2xi32, #tpu.memory_space<smem>>) -> (i32, i32, i32) {
    %c0_i32 = arith.constant 0 : i32
    %c0_i32_0 = arith.constant 0 : i32
    %c0_i32_1 = arith.constant 0 : i32
    return %arg0, %c0_i32, %c0_i32_0 : i32, i32, i32
  }
  func.func @transform_6(%arg0: i32, %arg1: memref<2xi32, #tpu.memory_space<smem>>) -> (i32, i32, i32) {
    %c0_i32 = arith.constant 0 : i32
    %c0_i32_0 = arith.constant 0 : i32
    %c0_i32_1 = arith.constant 0 : i32
    return %arg0, %c0_i32, %c0_i32_0 : i32, i32, i32
  }
  func.func @transform_7(%arg0: i32, %arg1: memref<2xi32, #tpu.memory_space<smem>>) -> (i32, i32, i32) {
    %c0_i32 = arith.constant 0 : i32
    %c0_i32_0 = arith.constant 0 : i32
    %c0_i32_1 = arith.constant 0 : i32
    return %arg0, %c0_i32, %c0_i32_0 : i32, i32, i32
  }
  func.func @transform_8(%arg0: i32, %arg1: memref<2xi32, #tpu.memory_space<smem>>) -> (i32, i32, i32) {
    %c0_i32 = arith.constant 0 : i32
    %c0_i32_0 = arith.constant 0 : i32
    %c0_i32_1 = arith.constant 0 : i32
    return %arg0, %c0_i32, %c0_i32_0 : i32, i32, i32
  }
  func.func @transform_9(%arg0: i32, %arg1: memref<2xi32, #tpu.memory_space<smem>>) -> (i32, i32, i32) {
    %c0_i32 = arith.constant 0 : i32
    %c0_i32_0 = arith.constant 0 : i32
    %c0_i32_1 = arith.constant 0 : i32
    return %arg0, %c0_i32, %c0_i32_0 : i32, i32, i32
  }
  func.func @transform_10(%arg0: i32, %arg1: memref<2xi32, #tpu.memory_space<smem>>) -> (i32, i32, i32) {
    %c0_i32 = arith.constant 0 : i32
    %c0_i32_0 = arith.constant 0 : i32
    %c0_i32_1 = arith.constant 0 : i32
    return %arg0, %c0_i32, %c0_i32_0 : i32, i32, i32
  }
  func.func @transform_11(%arg0: i32, %arg1: memref<2xi32, #tpu.memory_space<smem>>) -> (i32, i32, i32) {
    %c0_i32 = arith.constant 0 : i32
    %c0_i32_0 = arith.constant 0 : i32
    %c0_i32_1 = arith.constant 0 : i32
    return %arg0, %c0_i32, %c0_i32_0 : i32, i32, i32
  }
  func.func @transform_12(%arg0: i32, %arg1: memref<2xi32, #tpu.memory_space<smem>>) -> (i32, i32, i32) {
    %c0_i32 = arith.constant 0 : i32
    %c0_i32_0 = arith.constant 0 : i32
    %c0_i32_1 = arith.constant 0 : i32
    return %arg0, %c0_i32, %c0_i32_0 : i32, i32, i32
  }
  func.func @transform_13(%arg0: i32, %arg1: memref<2xi32, #tpu.memory_space<smem>>) -> (i32, i32, i32) {
    %c0_i32 = arith.constant 0 : i32
    %c0_i32_0 = arith.constant 0 : i32
    %c0_i32_1 = arith.constant 0 : i32
    %c0_i32_2 = arith.constant 0 : i32
    return %c0_i32, %c0_i32_0, %c0_i32_1 : i32, i32, i32
  }
  func.func @transform_14(%arg0: i32, %arg1: memref<2xi32, #tpu.memory_space<smem>>) -> (i32, i32, i32) {
    %c1_i32 = arith.constant 1 : i32
    %0 = arith.subi %arg0, %c1_i32 : i32
    %c0_i32 = arith.constant 0 : i32
    %1 = arith.maxsi %0, %c0_i32 : i32
    %c0_i32_0 = arith.constant 0 : i32
    %c0_i32_1 = arith.constant 0 : i32
    %c0_i32_2 = arith.constant 0 : i32
    return %1, %c0_i32_0, %c0_i32_1 : i32, i32, i32
  }
  func.func @transform_15(%arg0: i32, %arg1: memref<2xi32, #tpu.memory_space<smem>>) -> (i32, i32, i32) {
    %c1_i32 = arith.constant 1 : i32
    %0 = arith.subi %arg0, %c1_i32 : i32
    %c0_i32 = arith.constant 0 : i32
    %1 = arith.maxsi %0, %c0_i32 : i32
    %c0_i32_0 = arith.constant 0 : i32
    %c0_i32_1 = arith.constant 0 : i32
    %c0_i32_2 = arith.constant 0 : i32
    return %1, %c0_i32_0, %c0_i32_1 : i32, i32, i32
  }
}

</mosaic_0001>

<bundles_post_ra>
// kernel: tpu_custom_call.1
= control target key start
LH: loop header
LB: loop body
LE: loop exit
PB: predicated region body
PF: predicated region fallthrough
CT: control target
= control target key end

     0   :  { %s3977_s0 = inlined_call_operand.vmem [shape: s32[2], index: 0, kind: input, shape index: {}]   ;;  %s3978_s1 = inlined_call_operand.vmem [shape: f32[2,8,32], index: 1, kind: input, shape index: {}]   ;;  %s3979_s2 = inlined_call_operand.vmem [shape: f32[3,1,32], index: 2, kind: input, shape index: {}]   ;;  %s3980_s3 = inlined_call_operand.vmem [shape: f32[3,1,32], index: 3, kind: input, shape index: {}]   ;;  %s3981_s4 = inlined_call_operand.vmem [shape: f32[3,32,96], index: 4, kind: input, shape index: {}]   ;;  %s3982_s5 = inlined_call_operand.vmem [shape: f32[3,1,96], index: 5, kind: input, shape index: {}]   ;;  %s3983_s6 = inlined_call_operand.vmem [shape: f32[3,32,32], index: 6, kind: input, shape index: {}]   ;;  %s3984_s7 = inlined_call_operand.vmem [shape: f32[3,1,32], index: 7, kind: input, shape index: {}]   ;;  %s3985_s8 = inlined_call_operand.vmem [shape: f32[3,1,32], index: 8, kind: input, shape index: {}]   ;;  %s3986_s9 = inlined_call_operand.vmem [shape: f32[3,1,32], index: 9, kind: input, shape index: {}]   ;;  %s3987_s10 = inlined_call_operand.vmem [shape: f32[3,32,128], index: 10, kind: input, shape index: {}]   ;;  %s3988_s11 = inlined_call_operand.vmem [shape: f32[3,1,128], index: 11, kind: input, shape index: {}]   ;;  %s3989_s12 = inlined_call_operand.vmem [shape: f32[3,128,32], index: 12, kind: input, shape index: {}]   ;;  %s3990_s13 = inlined_call_operand.vmem [shape: f32[3,1,32], index: 13, kind: input, shape index: {}]   ;;  %s3991_s14 = inlined_call_operand.hbm [shape: f32[2,8,32], index: 14, kind: output, shape index: {0}]   ;;  %s3992_s15 = inlined_call_operand.hbm [shape: f32[2,2,32], index: 15, kind: output, shape index: {1}]   ;;  %s3993_s16 = inlined_call_operand.hbm [shape: f32[2,2,32], index: 16, kind: output, shape index: {2}]  }
   0x1   :  { %4011 = sst [smem:[#allocation21_spill]] %s3977_s0 }
   0x2   :  { %4012 = sst [smem:[#allocation22_spill]] %s3978_s1 }
   0x3   :  { %4013 = sst [smem:[#allocation23_spill]] %s3979_s2 }
   0x4   :  { %4014 = sst [smem:[#allocation24_spill]] %s3981_s4 }
   0x5   :  { %4015 = sst [smem:[#allocation25_spill]] %s3983_s6 }
   0x6   :  { %4016 = sst [smem:[#allocation26_spill]] %s3991_s14 }
   0x7   :  { %4017 = sst [smem:[#allocation27_spill]] %s3992_s15 }
   0x8   :  { %4018 = sst [smem:[#allocation28_spill]] %s3993_s16 }
   0x9   :  { %s4019_s23 = sld [smem:[#allocation21_spill]] }
   0xf   :  { %s22_s1 = sshll.u32 %s4019_s23, 4  ;;  %s23_s1 = int_to_ptr.vmem [resolvable:$true] %s22_s1 }
  0x10   :  { %s3282_s24 = scalar_lea.vmem %s23_s1, 16  ;;  %p3287_p1 = scmp.lt.s32.totalorder %s23_s1, %s23_s1 }
  0x11   :  { %p3283_p0 = scmp.ne.s32.totalorder %s23_s1, %s3282_s24  ;;  %p3288_p2 = scmp.lt.s32.totalorder %s3282_s24, %s3282_s24 }
  0x13   :  { %p3289_p3 = por %p3288_p2, %p3287_p1 }
  0x15   :  { %p3290_p4 = pnand %p3289_p3, %p3283_p0 }
  0x17   :  { %3293 = shalt.err (!%p3290_p4)  }
  0x18   :  { %s3412_s25 = smov [#allocation4]  }
  0x19   :  { %25 = dma.vmem_to_smem %s23_s1, 16, %s3412_s25, [#allocation3] }
  0x1a   :  { %3386 = dma.done.wait [#allocation3], 16 }
  0x1b   :  { %3387 = vsyncadd [#allocation3], 4294967280 }
  0x1c   :  { %27 = sfence }
  0x1d   :  { %28 = vsyncpa [#allocation6], 0 }
  0x1e   :  { %29 = vsyncpa [#allocation8], 0 }
  0x1f   :  { %31 = vsyncpa [#allocation8 + $0x1], 0  ;;  %s3521_s26 = smov 0   ;;  %s3523_s27 = smov 0  }
  0x20   :  { %s3525_s28 = smov 0   ;;  %s3527_s29 = smov 0  }
  0x21 LB: > { %4020 = sst [smem:[#allocation13_spill]] %s3402_s27  ;;  %s3540_s1 = sadd.s32 4294967295, %s3410_s29   ;;  %s3410_s29 = sphi %s3527_s29, %s4054_s29   ;;  %s3406_s28 = sphi %s3525_s28, %s4057_s28   ;;  %s3402_s27 = sphi %s3523_s27, %s4056_s27   ;;  %s3398_s26 = sphi %s3521_s26, %s4055_s26  }
  0x22   : > { %4021 = sst [smem:[#allocation14_spill]] %s3406_s28  ;;  %s3995_s30 = sadd.s32 4294967294, %s3410_s29  }
  0x23   : > { %4022 = sst [smem:[#allocation15_spill]] %s3410_s29  ;;  %s3544_s0 = sadd.s32 1, %s3410_s29  }
  0x24   : > { %4023 = sst [smem:[#allocation16_spill]] %s3544_s0  ;;  %p396_p5 = scmp.gt.s32.totalorder %s3540_s1, 0 }
  0x25   : > { %s2874_s17 = sadd.s32 4294967295, %s3544_s0  ;;  %s404_s18 = sadd.s32 1, %s3406_s28 }
  0x26   : > { %s397_s19 = scalar_select %p396_p5, %s3540_s1, 0 }
  0x27   : > { %p399_p6 = scmp.gt.s32.totalorder %s2874_s17, 0  ;;  %p414_p7 = scmp.ne.s32.totalorder %s3406_s28, %s3402_s27 }
  0x28   : > { %p4010_p8 = scmp.eq.s32.totalorder %s3540_s1, 2  ;;  %p420_p9 = scmp.ne.s32.totalorder %s3402_s27, %s3398_s26 }
  0x29   : > { %s4059_s17 = smov (!%p399_p6, %s2874_s17), 0  ;;  %p421_p11 = scmp.eq.s32.totalorder %s3995_s30, 2 }
  0x2a   : > { %p3556_p10 = por %p4010_p8, %p414_p7  ;;  %s401_s21 = ssub.s32 %s397_s19, %s4059_s17 }
  0x2b   : > { %p2879_p12 = scmp.ge.s32.totalorder %s3410_s29, 1  ;;  %p402_p13 = scmp.eq.s32.totalorder %s401_s21, 0 }
  0x2c   : > { %s4024_s20 = scalar_select %p3556_p10, 1, 0 }
  0x2d   : > { %p3563_p0 = por %p421_p11, %p420_p9  ;;  %p554_p1 = scmp.lt.s32.totalorder %s3410_s29, 4 }
  0x2e   : > { %4025 = sst [smem:[#allocation17_spill]] %s4024_s20 }
  0x2f   : > { %s4026_s22 = scalar_select %p3563_p0, 1, 0 }
  0x30   : > { %s3569_s23 = scalar_select %p402_p13, %s3406_s28, %s404_s18  }
  0x31   : > { %4027 = sst [smem:[#allocation18_spill]] %s4026_s22  ;;  %p555_p2 = pnand %p2879_p12, %p554_p1 }
  0x32   : > { %4028 = sst [smem:[#allocation19_spill]] %s3569_s23 }
  0x33   : > { %558 = sbr.rel (%p555_p2) target bundleno = 4101 (0x1005), region = 72 }
  0x38   : > { %s636_s24 = sand.u32 1, %s3402_s27   ;;  %p646_p3 = scmp.lt.s32.totalorder %s3540_s1, 2 }
  0x39   : > { %s3573_s25 = sshll.u32 %s636_s24, 1  ;;  %s4030_s4 = sld [smem:[#allocation24_spill]] }
  0x3a   : > { %s3576_s26 = scalar_select %p646_p3, %s3540_s1, 2 }
  0x3b   : > { %s4031_s6 = sld [smem:[#allocation25_spill]]  ;;  %s638_s28 = scalar_lea.vmem [#allocation7], %s3573_s25 }
  0x3c   : > { %s2945_s23 = sshll.u32 %s3576_s26, 5  ;;  %s670_s20 = scalar_lea.vmem %s3985_s8, %s3576_s26 }
  0x3d   : > { %s689_s27 = scalar_lea.vmem %s3990_s13, %s3576_s26  ;;  %s4008_s17 = scalar_lea.vmem [#allocation9], %s3573_s25 }
  0x3e   : > { %p2890_p4 = scmp.ne.s32.totalorder %s3540_s1, 0 }
  0x3f   : > { %s3594_s22 = scalar_lea.vmem %s4030_s4, %s2945_s23  ;;  %s3616_s4 = scalar_lea.vmem %s3987_s10, %s2945_s23 }
  0x40   : > { %699 = sbr.rel (%p2890_p4) target bundleno = 72 (0x48), region = 76  ;;  %s4033_s19 = sld [smem:[#allocation22_spill]] (!%p2890_p4) }
  0x41   : > { %s3599_s14 = scalar_lea.vmem %s4031_s6, %s2945_s23  ;;  %s681_s6 = scalar_lea.vmem %s3988_s11, %s3576_s26 }
  0x42   : > { %4032 = sst [smem:[#allocation20_spill]] %s3599_s14  ;;  %s2948_s14 = sshll.u32 %s3576_s26, 7 }
  0x43   : > { %s3626_s21 = scalar_lea.vmem %s3989_s12, %s2948_s14 }
  0x45   : > { %vm702_vm0 = vcmask 261120  }
  0x46   : > { %v700_v0 = vld [vmem:[%s4033_s19] sm:$0xff]  ;;  %v701_v1 = vld [vmem:[%s4033_s19 + $0x8] sm:$0xff] }
  0x47   : > { %703 = vst.msk [vmem:[#allocation2] sm:$0xff] %vm702_vm0, %v700_v0  ;;  %704 = vst.msk [vmem:[#allocation2 + $0x8] sm:$0xff] %vm702_vm0, %v701_v1 }
  0x48 PF: > { %vm709_vm1 = vcmask 261120   ;;  %v756_v16 = vld [vmem:[%s3594_s22 + $0x18] sm:$0xff]  ;;  %v755_v17 = vld [vmem:[%s3594_s22 + $0x10] sm:$0xff]  ;;  %v754_v18 = vld [vmem:[%s3594_s22 + $0x8] sm:$0xff]  ;;  %s4034_s2 = sld [smem:[#allocation23_spill]]  ;;  %v3413_v36 = vmov 0.0   ;;  %s4037_s16 = scalar_lea.vmem %s3982_s5, %s3576_s26 }
  0x49   : > { %3017 = vmatprep.subr.mxu1 %v756_v16  ;;  %v753_v19 = vld [vmem:[%s3594_s22] sm:$0xff]  ;;  %s4036_s22 = scalar_lea.vmem %s3980_s3, %s3576_s26  ;;  %3038 = vmatprep.subr.mxu0 %v3413_v36  ;;  %vm3414_vm2 = vmmov 0   ;;  %s3415_s29 = smov 96   ;;  %vm848_vm3 = vcmask 64512   ;;  %vm2201_vm4 = vcmask 195584   ;;  %vm2198_vm5 = vcmask 130048  }
  0x4a   : > { %3018 = vmatpush3.msra.mxu1 %v756_v16  ;;  %v2892_v29 = vld [vmem:[%s4036_s22] ss:$0 sm:$0xff]  ;;  %3040 = vmatprep.mubr.msk.f32.mxu0 %vm3414_vm2, %v3413_v36  ;;  %s3416_s14 = smov 64   ;;  %s3417_s15 = smov 88  }
  0x4b   : > { %3019 = vmatprep.subr.mxu1 %v755_v17  ;;  %v2893_v37 = vld [vmem:[%s4037_s16] ss:$0 sm:$0xff]  ;;  %s3419_s30 = smov 56   ;;  %s3420_s24 = smov 80  }
  0x4c   : > { %3020 = vmatpush3.msra.mxu1 %v755_v17  ;;  %s3421_s22 = smov 112   ;;  %s3422_s23 = smov 48  }
  0x4d   : > { %3021 = vmatprep.subr.mxu1 %v754_v18  ;;  %s3423_s0 = smov 72   ;;  %s3424_s16 = smov 104  }
  0x4e   : > { %v3641_v2 = vld [vmem:[#allocation2] sm:$0xff]  ;;  %v3643_v3 = vld [vmem:[#allocation2 + $0x8] sm:$0xff]  ;;  %3022 = vmatpush3.msra.mxu1 %v754_v18  ;;  %s4035_s18 = scalar_lea.vmem %s4034_s2, %s3576_s26  ;;  %p2931_p5 = scmp.ne.s32.totalorder %s3540_s1, 2 }
  0x4f   : > { %v710_v4 = vsel %vm709_vm1, %v3641_v2, 0.0  ;;  %v713_v5 = vsel %vm709_vm1, %v3643_v3, 0.0  ;;  %3023 = vmatprep.subr.mxu1 %v753_v19  ;;  %v2891_v27 = vld [vmem:[%s4035_s18] ss:$0 sm:$0xff]  ;;  %s3418_s18 = smov 120  }
  0x50   : > { %711 = vadd.xlane.f32.xlu0 %v710_v4  ;;  %3024 = vmatpush3.msra.mxu1 %v753_v19 }
  0x51   : > { %3028 = vmatprep.subr.mxu1 %v3413_v36 }
  0x54   : > { %714 = vadd.xlane.f32.xlu0 %v713_v5 }
  0xd9   : > { %v712_v6 = vpop.xlane.xlu0 %711 }
  0xda   : > { %v717_v7 = vmul.f32 0.03125, %v712_v6 }
  0xdc   : > { %v719_v8 = vsub.f32 %v3641_v2, %v717_v7 }
  0xdd   : > { %v715_v9 = vpop.xlane.xlu0 %714 }
  0xde   : > { %v718_v10 = vmul.f32 0.03125, %v715_v9  ;;  %v721_v11 = vmul.f32 %v719_v8, %v719_v8 }
  0xe0   : > { %v720_v12 = vsub.f32 %v3643_v3, %v718_v10  ;;  %v723_v13 = vsel %vm709_vm1, %v721_v11, 0.0 }
  0xe1   : > { %724 = vadd.xlane.f32.xlu1 %v723_v13 }
  0xe2   : > { %v722_v14 = vmul.f32 %v720_v12, %v720_v12 }
  0xe4   : > { %v726_v15 = vsel %vm709_vm1, %v722_v14, 0.0 }
  0xe5   : > { %727 = vadd.xlane.f32.xlu1 %v726_v15 }
 0x16a   : > { %v725_v20 = vpop.xlane.xlu1 %724 }
 0x16b   : > { %v729_v21 = vmul.f32 0.03125, %v725_v20 }
 0x16d   : > { %v731_v22 = vadd.f32 1e-05, %v729_v21 }
 0x16e   : > { %v728_v23 = vpop.xlane.xlu1 %727 }
 0x16f   : > { %3234 = vrsqrt.f32 %v731_v22  ;;  %v730_v24 = vmul.f32 0.03125, %v728_v23 }
 0x171   : > { %v732_v25 = vadd.f32 1e-05, %v730_v24 }
 0x173   : > { %3236 = vrsqrt.f32 %v732_v25 }
 0x17c   : > { %v3235_v26 = vpop.eup %3234 }
 0x17d   : > { %v735_v28 = vmul.f32 %v3235_v26, %v719_v8 }
 0x17f   : > { %v743_v30 = vmul.f32 %v2891_v27, %v735_v28 }
 0x180   : > { %v3237_v31 = vpop.eup %3236 }
 0x181   : > { %v736_v32 = vmul.f32 %v3237_v31, %v720_v12  ;;  %v751_v33 = vadd.f32 %v2892_v29, %v743_v30 }
 0x183   : > { %v744_v34 = vmul.f32 %v2891_v27, %v736_v32  ;;  %3025 = vmatprep.mubr.msk.f32.mxu1 %vm709_vm1, %v751_v33 }
 0x185   : > { %v752_v35 = vadd.f32 %v2892_v29, %v744_v34 }
 0x187   : > { %3026 = vmatmul.mubr.msk.f32.vlgmr.msra.gmra.mxu1 %vm709_vm1, %v752_v35 }
 0x188   : > { %3030 = vmatprep.mubr.msk.f32.mxu1 %vm3414_vm2, %v3413_v36 }
 0x247   : > { %v3027_v38 = vpop.f32.mrf.mxu1 }
 0x248   : > { %v3680_v39 = vadd.f32 %v3027_v38, %v2893_v37 }
 0x249   : > { %v836_v40 = vpop.f32.mrf.mxu1 }
 0x24a   : > { %v3682_v41 = vadd.f32 %v2893_v37, %v836_v40  ;;  %924 = vrot.lane.b32.xlu1 %v3680_v39, %s3415_s29 }
 0x24c   : > { %846 = vrot.lane.b32.xlu0 %v3682_v41, %s3415_s29  ;;  %s3425_s29 = smov 40  }
 0x2bc   : > { %v925_v43 = vpop.permute.xlu1 %924 }
 0x2be   : > { %v847_v42 = vpop.permute.xlu0 %846 }
 0x2bf   : > { %3029 = vmatpush3.xpose.msk.msra.mxu1 %vm848_vm3, %v847_v42 }
 0x2c0   : > { %3033 = vmatprep.subr.mxu1 %v3413_v36 }
 0x2c2   : > { %3031 = vmatmul.mubr.msk.f32.vlgmr.msra.gmra.mxu1 %vm848_vm3, %v3682_v41 }
 0x2c3   : > { %3034 = vmatpush3.xpose.msk.msra.mxu1 %vm848_vm3, %v925_v43  ;;  %3035 = vmatprep.mubr.msk.f32.mxu1 %vm3414_vm2, %v3413_v36 }
 0x2c4   : > { %3043 = vmatprep.subr.mxu1 %v3413_v36 }
 0x2c6   : > { %3036 = vmatmul.mubr.msk.f32.vlgmr.msra.gmra.mxu1 %vm848_vm3, %v3680_v39 }
 0x2c7   : > { %3045 = vmatprep.mubr.msk.f32.mxu1 %vm3414_vm2, %v3413_v36 }
 0x382   : > { %v919_v44 = vpop.f32.mrf.mxu1 }
 0x383   : > { %v1000_v45 = vmul.f32 0.35355338, %v919_v44 }
 0x384   : > { %v3032_v46 = vpop.f32.mrf.mxu1 }
 0x385   : > { %v1002_v47 = vsel %vm848_vm3, %v1000_v45, -inf }
 0x386   : > { %1003 = vmax.xlane.f32.xlu1 %v1002_v47  ;;  %v996_v48 = vpop.f32.mrf.mxu1 }
 0x387   : > { %v1001_v49 = vmul.f32 0.35355338, %v996_v48 }
 0x388   : > { %v3037_v50 = vpop.f32.mrf.mxu1 }
 0x389   : > { %v1005_v51 = vsel %vm848_vm3, %v1001_v49, -inf }
 0x38a   : > { %1006 = vmax.xlane.f32.xlu0 %v1005_v51 }
 0x397   : > { %1100 = vrot.lane.b32.xlu1 %v3680_v39, %s3416_s14 }
 0x39b   : > { %1178 = vrot.lane.b32.xlu1 %v3682_v41, %s3417_s15 }
 0x39f   : > { %1256 = vrot.lane.b32.xlu1 %v3680_v39, %s3417_s15  ;;  %s3427_s15 = smov 16  }
 0x40f   : > { %v1004_v52 = vpop.xlane.xlu1 %1003 }
 0x410   : > { %v1008_v53 = vsub.f32 %v1000_v45, %v1004_v52 }
 0x412   : > { %v1010_v54 = vmul.f32 1.442695, %v1008_v53 }
 0x413   : > { %v1101_v55 = vpop.permute.xlu1 %1100  ;;  %v1007_v56 = vpop.xlane.xlu0 %1006 }
 0x414   : > { %3238 = vpow2.f32 %v1010_v54  ;;  %v1009_v57 = vsub.f32 %v1001_v49, %v1007_v56  ;;  %3044 = vmatpush3.msra.mxu1 %v1101_v55 }
 0x415   : > { %3053 = vmatprep.subr.mxu1 %v3413_v36 }
 0x416   : > { %v1012_v58 = vmul.f32 1.442695, %v1009_v57 }
 0x417   : > { %v1179_v63 = vpop.permute.xlu1 %1178 }
 0x418   : > { %3240 = vpow2.f32 %v1012_v58 }
 0x41b   : > { %v1257_v0 = vpop.permute.xlu1 %1256 }
 0x421   : > { %v3239_v59 = vpop.eup %3238 }
 0x422   : > { %v1014_v60 = vsel %vm848_vm3, %v3239_v59, 0.0 }
 0x423   : > { %1015 = vadd.xlane.f32.xlu0 %v1014_v60 }
 0x425   : > { %v3241_v61 = vpop.eup %3240 }
 0x426   : > { %v1017_v62 = vsel %vm848_vm3, %v3241_v61, 0.0 }
 0x427   : > { %1018 = vadd.xlane.f32.xlu1 %v1017_v62 }
 0x438   : > { %1254 = vrot.lane.b32.xlu1 %v3680_v39, %s3418_s18 }
 0x439   : > { %1024 = vrot.lane.b32.xlu0 %v3682_v41, %s3416_s14  ;;  %s3426_s14 = smov 8  }
 0x43d   : > { %1176 = vrot.lane.b32.xlu0 %v3682_v41, %s3418_s18  ;;  %s4038_s18 = sld [smem:[#allocation20_spill]] }
 0x4ac   : > { %v1016_v1 = vpop.xlane.xlu0 %1015 }
 0x4ad   : > { %3242 = vrcp.f32 %v1016_v1 }
 0x4b0   : > { %v1019_v4 = vpop.xlane.xlu1 %1018  ;;  %v1025_v5 = vpop.permute.xlu0 %1024 }
 0x4b1   : > { %3244 = vrcp.f32 %v1019_v4  ;;  %3039 = vmatpush3.msra.mxu0 %v1025_v5 }
 0x4b2   : > { %3048 = vmatprep.subr.mxu0 %v3413_v36 }
 0x4b4   : > { %v1177_v10 = vpop.permute.xlu0 %1176  ;;  %v1255_v11 = vpop.permute.xlu1 %1254 }
 0x4ba   : > { %v3243_v6 = vpop.eup %3242 }
 0x4bb   : > { %v1022_v7 = vmul.f32 %v3243_v6, %v3239_v59 }
 0x4bd   : > { %3041 = vmatmul.mubr.msk.f32.vlgmr.msra.gmra.mxu0 %vm848_vm3, %v1022_v7 }
 0x4be   : > { %v3245_v8 = vpop.eup %3244  ;;  %3049 = vmatpush3.xpose.msk.msra.mxu0 %vm848_vm3, %v1179_v63  ;;  %3050 = vmatprep.mubr.msk.f32.mxu0 %vm3414_vm2, %v3413_v36 }
 0x4bf   : > { %v1023_v9 = vmul.f32 %v3245_v8, %v3241_v61  ;;  %3058 = vmatprep.subr.mxu0 %v3413_v36 }
 0x4c1   : > { %3046 = vmatmul.mubr.msk.f32.vlgmr.msra.gmra.mxu1 %vm848_vm3, %v1023_v9  ;;  %3051 = vmatmul.mubr.msk.f32.vlgmr.msra.gmra.mxu0 %vm848_vm3, %v1177_v10 }
 0x4c2   : > { %3054 = vmatpush3.xpose.msk.msra.mxu1 %vm848_vm3, %v1257_v0  ;;  %3055 = vmatprep.mubr.msk.f32.mxu1 %vm3414_vm2, %v3413_v36 }
 0x4c3   : > { %3063 = vmatprep.subr.mxu1 %v3413_v36  ;;  %3060 = vmatprep.mubr.msk.f32.mxu0 %vm3414_vm2, %v3413_v36 }
 0x4c5   : > { %3056 = vmatmul.mubr.msk.f32.vlgmr.msra.gmra.mxu1 %vm848_vm3, %v1255_v11 }
 0x4c6   : > { %3065 = vmatprep.mubr.msk.f32.mxu1 %vm3414_vm2, %v3413_v36 }
 0x57d   : > { %v3726_v12 = vpop.f32.mrf.mxu0 }
 0x57f   : > { %v3042_v13 = vpop.f32.mrf.mxu0 }
 0x581   : > { %v3728_v14 = vpop.f32.mrf.mxu1  ;;  %v1250_v15 = vpop.f32.mrf.mxu0 }
 0x582   : > { %v1332_v16 = vmul.f32 0.35355338, %v1250_v15 }
 0x583   : > { %v3047_v17 = vpop.f32.mrf.mxu1  ;;  %v3052_v18 = vpop.f32.mrf.mxu0 }
 0x584   : > { %v1334_v19 = vsel %vm848_vm3, %v1332_v16, -inf }
 0x585   : > { %1335 = vmax.xlane.f32.xlu0 %v1334_v19  ;;  %v1328_v20 = vpop.f32.mrf.mxu1 }
 0x586   : > { %v1333_v21 = vmul.f32 0.35355338, %v1328_v20 }
 0x587   : > { %v3057_v22 = vpop.f32.mrf.mxu1 }
 0x588   : > { %v1337_v23 = vsel %vm848_vm3, %v1333_v21, -inf }
 0x589   : > { %1338 = vmax.xlane.f32.xlu1 %v1337_v23 }
 0x59a   : > { %1432 = vrot.lane.b32.xlu1 %v3680_v39, %s3419_s30 }
 0x59b   : > { %1356 = vrot.lane.b32.xlu0 %v3682_v41, %s3419_s30  ;;  %s3428_s30 = smov 24  }
 0x59e   : > { %1510 = vrot.lane.b32.xlu1 %v3682_v41, %s3420_s24 }
 0x5a2   : > { %1588 = vrot.lane.b32.xlu1 %v3680_v39, %s3420_s24 }
 0x5a6   : > { %1586 = vrot.lane.b32.xlu1 %v3680_v39, %s3421_s22 }
 0x60e   : > { %v1336_v24 = vpop.xlane.xlu0 %1335 }
 0x60f   : > { %v1340_v25 = vsub.f32 %v1332_v16, %v1336_v24 }
 0x611   : > { %v1342_v26 = vmul.f32 1.442695, %v1340_v25 }
 0x612   : > { %v1357_v27 = vpop.permute.xlu0 %1356  ;;  %v1339_v28 = vpop.xlane.xlu1 %1338 }
 0x613   : > { %3246 = vpow2.f32 %v1342_v26  ;;  %v1341_v29 = vsub.f32 %v1333_v21, %v1339_v28  ;;  %3059 = vmatpush3.msra.mxu0 %v1357_v27 }
 0x614   : > { %3068 = vmatprep.subr.mxu0 %v3413_v36 }
 0x615   : > { %v1344_v30 = vmul.f32 1.442695, %v1341_v29 }
 0x616   : > { %v1433_v31 = vpop.permute.xlu1 %1432 }
 0x617   : > { %3248 = vpow2.f32 %v1344_v30  ;;  %3064 = vmatpush3.msra.mxu1 %v1433_v31 }
 0x618   : > { %3073 = vmatprep.subr.mxu1 %v3413_v36 }
 0x61a   : > { %v1511_v40 = vpop.permute.xlu1 %1510 }
 0x61e   : > { %v1589_v45 = vpop.permute.xlu1 %1588 }
 0x620   : > { %v3247_v32 = vpop.eup %3246 }
 0x621   : > { %v1346_v33 = vsel %vm848_vm3, %v3247_v32, 0.0 }
 0x622   : > { %1347 = vadd.xlane.f32.xlu0 %v1346_v33  ;;  %v1587_v48 = vpop.permute.xlu1 %1586 }
 0x624   : > { %v3249_v34 = vpop.eup %3248 }
 0x625   : > { %v1349_v35 = vsel %vm848_vm3, %v3249_v34, 0.0 }
 0x626   : > { %1350 = vadd.xlane.f32.xlu0 %v1349_v35 }
 0x63c   : > { %1508 = vrot.lane.b32.xlu0 %v3682_v41, %s3421_s22 }
 0x6ab   : > { %v1348_v37 = vpop.xlane.xlu0 %1347 }
 0x6ac   : > { %3250 = vrcp.f32 %v1348_v37 }
 0x6af   : > { %v1351_v38 = vpop.xlane.xlu0 %1350 }
 0x6b0   : > { %3252 = vrcp.f32 %v1351_v38 }
 0x6b3   : > { %v1509_v47 = vpop.permute.xlu0 %1508 }
 0x6b9   : > { %v3251_v42 = vpop.eup %3250 }
 0x6ba   : > { %v1354_v43 = vmul.f32 %v3251_v42, %v3247_v32 }
 0x6bc   : > { %3061 = vmatmul.mubr.msk.f32.vlgmr.msra.gmra.mxu0 %vm848_vm3, %v1354_v43 }
 0x6bd   : > { %v3253_v44 = vpop.eup %3252  ;;  %3069 = vmatpush3.xpose.msk.msra.mxu0 %vm848_vm3, %v1511_v40  ;;  %3070 = vmatprep.mubr.msk.f32.mxu0 %vm3414_vm2, %v3413_v36 }
 0x6be   : > { %v1355_v46 = vmul.f32 %v3253_v44, %v3249_v34  ;;  %3078 = vmatprep.subr.mxu0 %v3413_v36 }
 0x6c0   : > { %3066 = vmatmul.mubr.msk.f32.vlgmr.msra.gmra.mxu1 %vm848_vm3, %v1355_v46  ;;  %3071 = vmatmul.mubr.msk.f32.vlgmr.msra.gmra.mxu0 %vm848_vm3, %v1509_v47 }
 0x6c1   : > { %3074 = vmatpush3.xpose.msk.msra.mxu1 %vm848_vm3, %v1589_v45  ;;  %3075 = vmatprep.mubr.msk.f32.mxu1 %vm3414_vm2, %v3413_v36 }
 0x6c2   : > { %3083 = vmatprep.subr.mxu1 %v3413_v36  ;;  %3080 = vmatprep.mubr.msk.f32.mxu0 %vm3414_vm2, %v3413_v36 }
 0x6c4   : > { %3076 = vmatmul.mubr.msk.f32.vlgmr.msra.gmra.mxu1 %vm848_vm3, %v1587_v48 }
 0x6c5   : > { %3085 = vmatprep.mubr.msk.f32.mxu1 %vm3414_vm2, %v3413_v36 }
 0x77c   : > { %v3758_v49 = vpop.f32.mrf.mxu0 }
 0x77e   : > { %v3062_v50 = vpop.f32.mrf.mxu0 }
 0x780   : > { %v3760_v51 = vpop.f32.mrf.mxu1  ;;  %v1582_v52 = vpop.f32.mrf.mxu0 }
 0x781   : > { %v1664_v53 = vmul.f32 0.35355338, %v1582_v52 }
 0x782   : > { %v3067_v54 = vpop.f32.mrf.mxu1  ;;  %v3072_v55 = vpop.f32.mrf.mxu0 }
 0x783   : > { %v1666_v56 = vsel %vm848_vm3, %v1664_v53, -inf  ;;  %v2207_v54 = vld [vmem:[%s4038_s18 + $0x18] sm:$0xff]  ;;  %v2205_v55 = vld [vmem:[%s4038_s18 + $0x8] sm:$0xff] }
 0x784   : > { %1667 = vmax.xlane.f32.xlu0 %v1666_v56  ;;  %v1660_v57 = vpop.f32.mrf.mxu1  ;;  %v2204_v56 = vld [vmem:[%s4038_s18] sm:$0xff] }
 0x785   : > { %v1665_v58 = vmul.f32 0.35355338, %v1660_v57 }
 0x786   : > { %v3077_v59 = vpop.f32.mrf.mxu1 }
 0x787   : > { %v1669_v60 = vsel %vm848_vm3, %v1665_v58, -inf }
 0x788   : > { %1670 = vmax.xlane.f32.xlu1 %v1669_v60 }
 0x799   : > { %1764 = vrot.lane.b32.xlu1 %v3680_v39, %s3422_s23 }
 0x79a   : > { %1688 = vrot.lane.b32.xlu0 %v3682_v41, %s3422_s23  ;;  %s4039_s23 = scalar_lea.vmem %s3984_s7, %s3576_s26 }
 0x79d   : > { %1842 = vrot.lane.b32.xlu1 %v3682_v41, %s3423_s0 }
 0x7a1   : > { %1920 = vrot.lane.b32.xlu1 %v3680_v39, %s3423_s0 }
 0x7a5   : > { %1918 = vrot.lane.b32.xlu1 %v3680_v39, %s3424_s16 }
 0x80d   : > { %v1668_v61 = vpop.xlane.xlu0 %1667 }
 0x80e   : > { %v1672_v62 = vsub.f32 %v1664_v53, %v1668_v61 }
 0x810   : > { %v1674_v63 = vmul.f32 1.442695, %v1672_v62 }
 0x811   : > { %v1689_v0 = vpop.permute.xlu0 %1688  ;;  %v1671_v1 = vpop.xlane.xlu1 %1670 }
 0x812   : > { %3254 = vpow2.f32 %v1674_v63  ;;  %v1673_v4 = vsub.f32 %v1665_v58, %v1671_v1  ;;  %3079 = vmatpush3.msra.mxu0 %v1689_v0 }
 0x813   : > { %3088 = vmatprep.subr.mxu0 %v3413_v36 }
 0x814   : > { %v1676_v5 = vmul.f32 1.442695, %v1673_v4 }
 0x815   : > { %v1765_v6 = vpop.permute.xlu1 %1764 }
 0x816   : > { %3256 = vpow2.f32 %v1676_v5  ;;  %3084 = vmatpush3.msra.mxu1 %v1765_v6 }
 0x817   : > { %3093 = vmatprep.subr.mxu1 %v3413_v36 }
 0x819   : > { %v1843_v15 = vpop.permute.xlu1 %1842 }
 0x81d   : > { %v1921_v19 = vpop.permute.xlu1 %1920 }
 0x81f   : > { %v3255_v7 = vpop.eup %3254 }
 0x820   : > { %v1678_v8 = vsel %vm848_vm3, %v3255_v7, 0.0 }
 0x821   : > { %1679 = vadd.xlane.f32.xlu0 %v1678_v8  ;;  %v1919_v22 = vpop.permute.xlu1 %1918 }
 0x823   : > { %v3257_v9 = vpop.eup %3256 }
 0x824   : > { %v1681_v10 = vsel %vm848_vm3, %v3257_v9, 0.0 }
 0x825   : > { %1682 = vadd.xlane.f32.xlu0 %v1681_v10 }
 0x83b   : > { %1840 = vrot.lane.b32.xlu0 %v3682_v41, %s3424_s16 }
 0x8aa   : > { %v1680_v11 = vpop.xlane.xlu0 %1679 }
 0x8ab   : > { %3258 = vrcp.f32 %v1680_v11 }
 0x8ae   : > { %v1683_v13 = vpop.xlane.xlu0 %1682 }
 0x8af   : > { %3260 = vrcp.f32 %v1683_v13 }
 0x8b2   : > { %v1841_v21 = vpop.permute.xlu0 %1840 }
 0x8b8   : > { %v3259_v16 = vpop.eup %3258 }
 0x8b9   : > { %v1686_v17 = vmul.f32 %v3259_v16, %v3255_v7 }
 0x8bb   : > { %3081 = vmatmul.mubr.msk.f32.vlgmr.msra.gmra.mxu0 %vm848_vm3, %v1686_v17 }
 0x8bc   : > { %v3261_v18 = vpop.eup %3260  ;;  %3089 = vmatpush3.xpose.msk.msra.mxu0 %vm848_vm3, %v1843_v15  ;;  %3090 = vmatprep.mubr.msk.f32.mxu0 %vm3414_vm2, %v3413_v36 }
 0x8bd   : > { %v1687_v20 = vmul.f32 %v3261_v18, %v3257_v9  ;;  %3098 = vmatprep.subr.mxu0 %v3413_v36 }
 0x8bf   : > { %3086 = vmatmul.mubr.msk.f32.vlgmr.msra.gmra.mxu1 %vm848_vm3, %v1687_v20  ;;  %3091 = vmatmul.mubr.msk.f32.vlgmr.msra.gmra.mxu0 %vm848_vm3, %v1841_v21 }
 0x8c0   : > { %3094 = vmatpush3.xpose.msk.msra.mxu1 %vm848_vm3, %v1921_v19  ;;  %3095 = vmatprep.mubr.msk.f32.mxu1 %vm3414_vm2, %v3413_v36 }
 0x8c1   : > { %3103 = vmatprep.subr.mxu1 %v3413_v36  ;;  %3100 = vmatprep.mubr.msk.f32.mxu0 %vm3414_vm2, %v3413_v36 }
 0x8c3   : > { %3096 = vmatmul.mubr.msk.f32.vlgmr.msra.gmra.mxu1 %vm848_vm3, %v1919_v22 }
 0x8c4   : > { %3105 = vmatprep.mubr.msk.f32.mxu1 %vm3414_vm2, %v3413_v36 }
 0x97b   : > { %v1760_v23 = vpop.f32.mrf.mxu0 }
 0x97d   : > { %v3082_v24 = vpop.f32.mrf.mxu0 }
 0x97f   : > { %v1836_v25 = vpop.f32.mrf.mxu1  ;;  %v1914_v26 = vpop.f32.mrf.mxu0 }
 0x980   : > { %v1996_v27 = vmul.f32 0.35355338, %v1914_v26 }
 0x981   : > { %v3087_v28 = vpop.f32.mrf.mxu1  ;;  %v3092_v29 = vpop.f32.mrf.mxu0 }
 0x982   : > { %v1998_v30 = vsel %vm848_vm3, %v1996_v27, -inf  ;;  %v2347_v28 = vld [vmem:[%s3616_s4 + $0x18] sm:$0xff]  ;;  %v2346_v29 = vld [vmem:[%s3616_s4 + $0x10] sm:$0xff] }
 0x983   : > { %1999 = vmax.xlane.f32.xlu0 %v1998_v30  ;;  %v1992_v31 = vpop.f32.mrf.mxu1  ;;  %v2345_v30 = vld [vmem:[%s3616_s4 + $0x8] sm:$0xff] }
 0x984   : > { %v1997_v32 = vmul.f32 0.35355338, %v1992_v31  ;;  %v2344_v31 = vld [vmem:[%s3616_s4] sm:$0xff] }
 0x985   : > { %v3097_v33 = vpop.f32.mrf.mxu1 }
 0x986   : > { %v2001_v34 = vsel %vm848_vm3, %v1997_v32, -inf }
 0x987   : > { %2002 = vmax.xlane.f32.xlu1 %v2001_v34 }
 0x998   : > { %2096 = vrot.lane.b32.xlu1 %v3680_v39, %s3425_s29 }
 0x99c   : > { %2174 = vrot.lane.b32.xlu1 %v3758_v49, %s3426_s14 }
 0x9a0   : > { %2176 = vrot.lane.b32.xlu1 %v3760_v51, %s3426_s14 }
 0x9a4   : > { %2184 = vrot.lane.b32.xlu1 %v1836_v25, %s3427_s15 }
 0xa0c   : > { %v2000_v36 = vpop.xlane.xlu0 %1999 }
 0xa0d   : > { %v2004_v35 = vsub.f32 %v1996_v27, %v2000_v36 }
 0xa0f   : > { %v2006_v37 = vmul.f32 1.442695, %v2004_v35 }
 0xa10   : > { %v2003_v38 = vpop.xlane.xlu1 %2002 }
 0xa11   : > { %3262 = vpow2.f32 %v2006_v37  ;;  %v2005_v40 = vsub.f32 %v1997_v32, %v2003_v38 }
 0xa13   : > { %v2008_v42 = vmul.f32 1.442695, %v2005_v40  ;;  %v2923_v40 = vld [vmem:[%s670_s20] ss:$0 sm:$0xff] }
 0xa14   : > { %v2097_v43 = vpop.permute.xlu1 %2096 }
 0xa15   : > { %3264 = vpow2.f32 %v2008_v42  ;;  %3104 = vmatpush3.msra.mxu1 %v2097_v43 }
 0xa16   : > { %3108 = vmatprep.subr.mxu1 %v2207_v54 }
 0xa18   : > { %v2175_v61 = vpop.permute.xlu1 %2174 }
 0xa19   : > { %v2196_v0 = vsel %vm848_vm3, %v3726_v12, %v2175_v61  ;;  %v2922_v12 = vld [vmem:[%s4039_s23] ss:$0 sm:$0xff]  ;;  %v2454_v61 = vld [vmem:[%s3626_s21 + $0x10] sm:$0xff] }
 0xa1c   : > { %v2177_v62 = vpop.permute.xlu1 %2176 }
 0xa1d   : > { %v2197_v7 = vsel %vm848_vm3, %v3728_v14, %v2177_v62  ;;  %v2453_v62 = vld [vmem:[%s3626_s21 + $0x8] sm:$0xff] }
 0xa1e   : > { %v3263_v39 = vpop.eup %3262 }
 0xa1f   : > { %v2010_v44 = vsel %vm848_vm3, %v3263_v39, 0.0 }
 0xa20   : > { %2011 = vadd.xlane.f32.xlu0 %v2010_v44  ;;  %v2185_v1 = vpop.permute.xlu1 %2184 }
 0xa21   : > { %v2200_v8 = vsel %vm2198_vm5, %v2197_v7, %v2185_v1 }
 0xa22   : > { %v3265_v45 = vpop.eup %3264 }
 0xa23   : > { %v2013_v46 = vsel %vm848_vm3, %v3265_v45, 0.0 }
 0xa24   : > { %2014 = vadd.xlane.f32.xlu0 %v2013_v46 }
 0xa3a   : > { %2020 = vrot.lane.b32.xlu0 %v3682_v41, %s3425_s29  ;;  %v2206_v41 = vld [vmem:[%s4038_s18 + $0x10] sm:$0xff] }
 0xa3e   : > { %2182 = vrot.lane.b32.xlu0 %v1760_v23, %s3427_s15  ;;  %s4040_s15 = scalar_lea.vmem %s3986_s9, %s3576_s26 }
 0xa3f   : > { %v2924_v43 = vld [vmem:[%s4040_s15] ss:$0 sm:$0xff] }
 0xaa9   : > { %v2012_v47 = vpop.xlane.xlu0 %2011 }
 0xaaa   : > { %3266 = vrcp.f32 %v2012_v47 }
 0xaad   : > { %v2015_v48 = vpop.xlane.xlu0 %2014 }
 0xaae   : > { %3268 = vrcp.f32 %v2015_v48 }
 0xab1   : > { %v2021_v49 = vpop.permute.xlu0 %2020 }
 0xab2   : > { %3099 = vmatpush3.msra.mxu0 %v2021_v49  ;;  %v2467_v49 = vld [vmem:[%s3626_s21 + $0x78] sm:$0xff] }
 0xab3   : > { %3130 = vmatprep.subr.mxu0 %v2467_v49 }
 0xab5   : > { %v2183_v63 = vpop.permute.xlu0 %2182 }
 0xab6   : > { %v2199_v4 = vsel %vm2198_vm5, %v2196_v0, %v2183_v63  ;;  %v2452_v63 = vld [vmem:[%s3626_s21] sm:$0xff] }
 0xab7   : > { %v3267_v50 = vpop.eup %3266  ;;  %v2925_v0 = vld [vmem:[%s681_s6] ss:$0 sm:$0xff] }
 0xab8   : > { %v2018_v51 = vmul.f32 %v3267_v50, %v3263_v39  ;;  %v2466_v50 = vld [vmem:[%s3626_s21 + $0x70] sm:$0xff] }
 0xaba   : > { %3101 = vmatmul.mubr.msk.f32.vlgmr.msra.gmra.mxu0 %vm848_vm3, %v2018_v51  ;;  %v2465_v51 = vld [vmem:[%s3626_s21 + $0x68] sm:$0xff] }
 0xabb   : > { %v3269_v52 = vpop.eup %3268  ;;  %3131 = vmatpush3.msra.mxu0 %v2467_v49 }
 0xabc   : > { %v2019_v53 = vmul.f32 %v3269_v52, %v3265_v45  ;;  %3132 = vmatprep.subr.mxu0 %v2466_v50  ;;  %v2464_v52 = vld [vmem:[%s3626_s21 + $0x60] sm:$0xff] }
 0xabd   : > { %3133 = vmatpush3.msra.mxu0 %v2466_v50 }
 0xabe   : > { %3106 = vmatmul.mubr.msk.f32.vlgmr.msra.gmra.mxu1 %vm848_vm3, %v2019_v53  ;;  %3134 = vmatprep.subr.mxu0 %v2465_v51  ;;  %v2463_v53 = vld [vmem:[%s3626_s21 + $0x58] sm:$0xff] }
 0xabf   : > { %3109 = vmatpush3.msra.mxu1 %v2207_v54  ;;  %3135 = vmatpush3.msra.mxu0 %v2465_v51  ;;  %v2462_v54 = vld [vmem:[%s3626_s21 + $0x50] sm:$0xff] }
 0xac0   : > { %3110 = vmatprep.subr.mxu1 %v2206_v41  ;;  %3136 = vmatprep.subr.mxu0 %v2464_v52 }
 0xac1   : > { %3111 = vmatpush3.msra.mxu1 %v2206_v41  ;;  %3137 = vmatpush3.msra.mxu0 %v2464_v52  ;;  %v2461_v41 = vld [vmem:[%s3626_s21 + $0x48] sm:$0xff] }
 0xac2   : > { %3112 = vmatprep.subr.mxu1 %v2205_v55  ;;  %3138 = vmatprep.subr.mxu0 %v2463_v53 }
 0xac3   : > { %3113 = vmatpush3.msra.mxu1 %v2205_v55  ;;  %3139 = vmatpush3.msra.mxu0 %v2463_v53  ;;  %v2460_v55 = vld [vmem:[%s3626_s21 + $0x40] sm:$0xff] }
 0xac4   : > { %3114 = vmatprep.subr.mxu1 %v2204_v56  ;;  %3140 = vmatprep.subr.mxu0 %v2462_v54 }
 0xac5   : > { %3115 = vmatpush3.msra.mxu1 %v2204_v56  ;;  %3141 = vmatpush3.msra.mxu0 %v2462_v54  ;;  %v2459_v56 = vld [vmem:[%s3626_s21 + $0x38] sm:$0xff] }
 0xac6   : > { %3119 = vmatprep.subr.mxu1 %v2347_v28  ;;  %3142 = vmatprep.subr.mxu0 %v2461_v41 }
 0xac7   : > { %3143 = vmatpush3.msra.mxu0 %v2461_v41 }
 0xac8   : > { %3144 = vmatprep.subr.mxu0 %v2460_v55 }
 0xac9   : > { %3145 = vmatpush3.msra.mxu0 %v2460_v55 }
 0xaca   : > { %3146 = vmatprep.subr.mxu0 %v2459_v56 }
 0xacb   : > { %3147 = vmatpush3.msra.mxu0 %v2459_v56 }
 0xb7a   : > { %v2092_v57 = vpop.f32.mrf.mxu0 }
 0xb7b   : > { %2190 = vrot.lane.b32.xlu0 %v2092_v57, %s3428_s30  ;;  %v2458_v57 = vld [vmem:[%s3626_s21 + $0x30] sm:$0xff] }
 0xb7c   : > { %v3102_v58 = vpop.f32.mrf.mxu0  ;;  %3148 = vmatprep.subr.mxu0 %v2458_v57 }
 0xb7d   : > { %3149 = vmatpush3.msra.mxu0 %v2458_v57  ;;  %v2457_v58 = vld [vmem:[%s3626_s21 + $0x28] sm:$0xff] }
 0xb7e   : > { %v2168_v59 = vpop.f32.mrf.mxu1  ;;  %3150 = vmatprep.subr.mxu0 %v2457_v58 }
 0xb7f   : > { %2192 = vrot.lane.b32.xlu1 %v2168_v59, %s3428_s30  ;;  %3151 = vmatpush3.msra.mxu0 %v2457_v58  ;;  %v2456_v59 = vld [vmem:[%s3626_s21 + $0x20] sm:$0xff] }
 0xb80   : > { %v3107_v60 = vpop.f32.mrf.mxu1  ;;  %3152 = vmatprep.subr.mxu0 %v2456_v59 }
 0xb81   : > { %3153 = vmatpush3.msra.mxu0 %v2456_v59  ;;  %v2455_v60 = vld [vmem:[%s3626_s21 + $0x18] sm:$0xff] }
 0xb82   : > { %3154 = vmatprep.subr.mxu0 %v2455_v60 }
 0xb83   : > { %3155 = vmatpush3.msra.mxu0 %v2455_v60 }
 0xb84   : > { %3156 = vmatprep.subr.mxu0 %v2454_v61 }
 0xb85   : > { %3157 = vmatpush3.msra.mxu0 %v2454_v61 }
 0xb86   : > { %3158 = vmatprep.subr.mxu0 %v2453_v62 }
 0xb87   : > { %3159 = vmatpush3.msra.mxu0 %v2453_v62 }
 0xb88   : > { %3160 = vmatprep.subr.mxu0 %v2452_v63 }
 0xb89   : > { %3161 = vmatpush3.msra.mxu0 %v2452_v63 }
 0xbed   : > { %v2191_v5 = vpop.permute.xlu0 %2190 }
 0xbee   : > { %v2202_v6 = vsel %vm2201_vm4, %v2199_v4, %v2191_v5 }
 0xbef   : > { %3116 = vmatprep.mubr.msk.f32.mxu1 %vm709_vm1, %v2202_v6 }
 0xbf1   : > { %v2193_v9 = vpop.permute.xlu1 %2192 }
 0xbf2   : > { %v2203_v10 = vsel %vm2201_vm4, %v2200_v8, %v2193_v9 }
 0xbf3   : > { %3117 = vmatmul.mubr.msk.f32.vlgmr.msra.gmra.mxu1 %vm709_vm1, %v2203_v10 }
 0xbf4   : > { %3120 = vmatpush3.msra.mxu1 %v2347_v28 }
 0xbf5   : > { %3121 = vmatprep.subr.mxu1 %v2346_v29 }
 0xbf6   : > { %3122 = vmatpush3.msra.mxu1 %v2346_v29 }
 0xbf7   : > { %3123 = vmatprep.subr.mxu1 %v2345_v30 }
 0xbf8   : > { %3124 = vmatpush3.msra.mxu1 %v2345_v30 }
 0xbf9   : > { %3125 = vmatprep.subr.mxu1 %v2344_v31 }
 0xbfa   : > { %3126 = vmatpush3.msra.mxu1 %v2344_v31 }
 0xcb3   : > { %v3118_v11 = vpop.f32.mrf.mxu1 }
 0xcb4   : > { %v2290_v13 = vadd.f32 %v3118_v11, %v3643_v3 }
 0xcb5   : > { %v2280_v15 = vpop.f32.mrf.mxu1 }
 0xcb6   : > { %v3818_v16 = vadd.f32 %v2922_v12, %v2290_v13  ;;  %v2289_v17 = vadd.f32 %v2280_v15, %v3641_v2 }
 0xcb8   : > { %v3821_v18 = vadd.f32 %v2922_v12, %v2289_v17  ;;  %v2305_v14 = vsel %vm709_vm1, %v3818_v16, 0.0 }
 0xcb9   : > { %2306 = vadd.xlane.f32.xlu1 %v2305_v14 }
 0xcba   : > { %v2302_v19 = vsel %vm709_vm1, %v3821_v18, 0.0 }
 0xcbb   : > { %2303 = vadd.xlane.f32.xlu0 %v2302_v19 }
 0xd42   : > { %v2307_v20 = vpop.xlane.xlu1 %2306 }
 0xd43   : > { %v2309_v3 = vmul.f32 0.03125, %v2307_v20 }
 0xd44   : > { %v2304_v21 = vpop.xlane.xlu0 %2303 }
 0xd45   : > { %v2308_v22 = vmul.f32 0.03125, %v2304_v21  ;;  %v2311_v23 = vsub.f32 %v3818_v16, %v2309_v3  ;;  %v2930_v21 = vld [vmem:[%s689_s27] ss:$0 sm:$0xff] }
 0xd47   : > { %v2310_v2 = vsub.f32 %v3821_v18, %v2308_v22  ;;  %v2313_v26 = vmul.f32 %v2311_v23, %v2311_v23 }
 0xd49   : > { %v2312_v24 = vmul.f32 %v2310_v2, %v2310_v2  ;;  %v2317_v27 = vsel %vm709_vm1, %v2313_v26, 0.0 }
 0xd4b   : > { %v2314_v25 = vsel %vm709_vm1, %v2312_v24, 0.0 }
 0xd4c   : > { %2315 = vadd.xlane.f32.xlu0 %v2314_v25 }
 0xd50   : > { %2318 = vadd.xlane.f32.xlu0 %v2317_v27 }
 0xdd5   : > { %v2316_v32 = vpop.xlane.xlu0 %2315 }
 0xdd6   : > { %v2320_v33 = vmul.f32 0.03125, %v2316_v32 }
 0xdd8   : > { %v2322_v34 = vadd.f32 1e-05, %v2320_v33 }
 0xdd9   : > { %v2319_v36 = vpop.xlane.xlu0 %2318 }
 0xdda   : > { %3270 = vrsqrt.f32 %v2322_v34  ;;  %v2321_v35 = vmul.f32 0.03125, %v2319_v36 }
 0xddc   : > { %v2323_v37 = vadd.f32 1e-05, %v2321_v35 }
 0xdde   : > { %3272 = vrsqrt.f32 %v2323_v37 }
 0xde7   : > { %v3271_v38 = vpop.eup %3270 }
 0xde8   : > { %v2326_v42 = vmul.f32 %v3271_v38, %v2310_v2 }
 0xdea   : > { %v2334_v39 = vmul.f32 %v2923_v40, %v2326_v42 }
 0xdeb   : > { %v3273_v44 = vpop.eup %3272 }
 0xdec   : > { %v2327_v45 = vmul.f32 %v3273_v44, %v2311_v23  ;;  %v2342_v46 = vadd.f32 %v2924_v43, %v2334_v39 }
 0xdee   : > { %v2335_v47 = vmul.f32 %v2923_v40, %v2327_v45  ;;  %3127 = vmatprep.mubr.msk.f32.mxu1 %vm709_vm1, %v2342_v46 }
 0xdf0   : > { %v2343_v48 = vadd.f32 %v2924_v43, %v2335_v47 }
 0xdf2   : > { %3128 = vmatmul.mubr.msk.f32.vlgmr.msra.gmra.mxu1 %vm709_vm1, %v2343_v48 }
 0xeb2   : > { %v3129_v1 = vpop.f32.mrf.mxu1 }
 0xeb3   : > { %v2433_v4 = vadd.f32 %v3129_v1, %v2925_v0 }
 0xeb4   : > { %v2427_v5 = vpop.f32.mrf.mxu1 }
 0xeb5   : > { %v2929_v6 = vmul.f32 -1.702, %v2433_v4  ;;  %v2428_v7 = vadd.f32 %v2925_v0, %v2427_v5 }
 0xeb7   : > { %v2442_v8 = vmul.f32 1.442695, %v2929_v6  ;;  %v2928_v9 = vmul.f32 -1.702, %v2428_v7 }
 0xeb9   : > { %3274 = vpow2.f32 %v2442_v8  ;;  %v2440_v10 = vmul.f32 1.442695, %v2928_v9 }
 0xebb   : > { %3276 = vpow2.f32 %v2440_v10 }
 0xec6   : > { %v3275_v11 = vpop.eup %3274 }
 0xec7   : > { %v2445_v12 = vadd.f32 1.0, %v3275_v11 }
 0xec8   : > { %v3277_v13 = vpop.eup %3276 }
 0xec9   : > { %v2444_v15 = vadd.f32 1.0, %v3277_v13  ;;  %3278 = vrcp.f32 %v2445_v12 }
 0xecb   : > { %3280 = vrcp.f32 %v2444_v15 }
 0xed6   : > { %v3279_v17 = vpop.eup %3278 }
 0xed7   : > { %v2451_v20 = vmul.f32 %v3279_v17, %v2433_v4 }
 0xed8   : > { %v3281_v14 = vpop.eup %3280 }
 0xed9   : > { %v2450_v19 = vmul.f32 %v3281_v14, %v2428_v7 }
 0xedb   : > { %3162 = vmatprep.mubr.f32.mxu0 %v2450_v19 }
 0xedc   : > { %3163 = vmatmul.mubr.f32.vlgmr.msra.gmra.mxu0 %v2451_v20 }
 0xf9c   : > { %v3164_v3 = vpop.f32.mrf.mxu0 }
 0xf9d   : > { %v2544_v22 = vadd.f32 %v3164_v3, %v3818_v16 }
 0xf9e   : > { %v2534_v23 = vpop.f32.mrf.mxu0 }
 0xf9f   : > { %v2553_v2 = vadd.f32 %v2930_v21, %v2544_v22  ;;  %v2543_v24 = vadd.f32 %v2534_v23, %v3821_v18  ;;  %2559 = sbr.rel (%p2931_p5) target bundleno = 4005 (0xfa5), region = 80 }
 0xfa1   : > { %2555 = vst.msk [vmem:[#allocation2 + $0x8] sm:$0xff] %vm709_vm1, %v2553_v2  ;;  %v2552_v25 = vadd.f32 %v2930_v21, %v2543_v24 }
 0xfa3   : > { %2554 = vst.msk [vmem:[#allocation2] sm:$0xff] %vm709_vm1, %v2552_v25 }
 0xfa4   : > { %2560 = vst.msk [vmem:[#allocation5] sm:$0xff] %vm709_vm1, %v2552_v25  ;;  %2561 = vst.msk [vmem:[#allocation5 + $0x8] sm:$0xff] %vm709_vm1, %v2553_v2 }
 0xfa5 PF: > { %p2932_p6 = scmp.lt.s32.totalorder %s3540_s1, 1 }
 0xfa6   : > { %s2580_s26 = sld [smem:[#allocation4]] (!%p2932_p6) }
 0xfa7   : > { %2565 = sbr.rel (%p2932_p6) target bundleno = 4033 (0xfc1), region = 84  ;;  %s2933_s27 = sld [smem:[#allocation4 + $0x1]] (!%p2932_p6) }
 0xfac   : > { %v2566_v16 = vsel %vm709_vm1, %v2552_v25, 0.0  ;;  %v2573_v18 = vsel %vm709_vm1, %v2553_v2, 0.0  ;;  %s2581_s30 = scalar_lea.vmem [#allocation2], %s2580_s26  ;;  %vm2590_vm6 = vcmask 1040384   ;;  %vm2600_vm7 = vcmask 254976  }
 0xfad   : > { %v2567_v26 = vrot.slane %v2566_v16, 4  ;;  %v2574_v27 = vrot.slane %v2573_v18, 4  ;;  %v2582_v34 = vld [vmem:[%s2581_s30] sm:$0x1]  ;;  %s2752_s24 = scalar_lea.vmem [#allocation2], %s2933_s27  ;;  %vm2605_vm8 = vcmask 1041409  }
 0xfae   : > { %v2934_v36 = vld [vmem:[%s2752_s24 + $0x8] sm:$0x1] }
 0xfaf   : > { %v2568_v28 = vadd.f32 %v2567_v26, %v2566_v16  ;;  %v2575_v29 = vadd.f32 %v2574_v27, %v2573_v18  ;;  %v2588_v37 = vrot.slane %v2934_v36, 7 }
 0xfb1   : > { %v2569_v30 = vrot.slane %v2568_v28, 2  ;;  %v2576_v31 = vrot.slane %v2575_v29, 2  ;;  %v2591_v42 = vsel %vm2590_vm6, %v2582_v34, %v2588_v37 }
 0xfb2   : > { %v2593_v39 = vrot.slane %v2591_v42, 1  ;;  %2601 = vst.msk [vmem:[%s638_s28] sm:$0x3] %vm2600_vm7, %v2591_v42 }
 0xfb3   : > { %v2570_v32 = vadd.f32 %v2569_v30, %v2568_v28  ;;  %v2577_v33 = vadd.f32 %v2576_v31, %v2575_v29 }
 0xfb5   : > { %v2571_v35 = vrot.slane %v2570_v32, 1  ;;  %v2578_v38 = vrot.slane %v2577_v33, 1 }
 0xfb7   : > { %v2572_v40 = vadd.f32 %v2571_v35, %v2570_v32  ;;  %v2579_v43 = vadd.f32 %v2578_v38, %v2577_v33 }
 0xfb9   : > { %v2596_v44 = vsub.f32 %v2572_v40, %v2591_v42  ;;  %v2597_v45 = vsub.f32 %v2579_v43, %v2593_v39 }
 0xfbb   : > { %v2598_v46 = vmul.f32 0.14285715, %v2596_v44  ;;  %v2599_v47 = vmul.f32 0.14285715, %v2597_v45 }
 0xfbd   : > { %v2604_v48 = vrot.slane %v2599_v47, 7 }
 0xfbf   : > { %v2606_v49 = vsel %vm2605_vm8, %v2604_v48, %v2598_v46 }
 0xfc0   : > { %2608 = vst.msk [vmem:[%s4008_s17] sm:$0x3] %vm2600_vm7, %v2606_v49 }
 0xfc1 PF: > { %s2609_s23 = sand.u32 1, %s3540_s1   ;;  %s2938_s0 = sadd.s32 4294967295, %s3540_s1 }
 0xfc2   : > { %p2636_p7 = scmp.gt.s32.totalorder %s2938_s0, 0  ;;  %s2644_s16 = sshll.u32 %s638_s28, 4  ;;  %s3893_s16 = int_to_ptr.vmem [resolvable:$true] %s2644_s16 }
 0xfc3   : > { %s3429_s4 = smov [#allocation5]   ;;  %s4042_s6 = sld [smem:[#allocation27_spill]] }
 0xfc4   : > { %s4061_s0 = smov (!%p2636_p7, %s2938_s0), 0  ;;  %s2625_s29 = sshll.u32 %s3429_s4, 4  ;;  %s3896_s29 = int_to_ptr.vmem [resolvable:$true] %s2625_s29 }
 0xfc5   : > { %s4009_s15 = sshll.u32 %s4061_s0, 5  ;;  %s3903_s28 = scalar_lea.sflag [#allocation8], %s2609_s23 }
 0xfc6   : > { %s3294_s26 = scalar_lea.vmem %s3893_s16, 32  ;;  %s3430_s27 = smov [#allocation7]  }
 0xfc7   : > { %p3295_p9 = scmp.ne.s32.totalorder %s3893_s16, %s3294_s26  ;;  %s3298_s30 = sshll.u32 %s3430_s27, 4  ;;  %s3299_s30 = int_to_ptr.vmem [resolvable:$false] %s3298_s30 }
 0xfc8   : > { %s3300_s24 = scalar_lea.vmem %s3299_s30, 64  ;;  %p3301_p13 = scmp.lt.s32.totalorder %s3893_s16, %s3299_s30 }
 0xfc9   : > { %s2642_s21 = scalar_lea.hbm %s4042_s6, %s4009_s15  ;;  %p3296_p11 = pnand %p3295_p9, %p3556_p10 }
 0xfca   : > { %p3302_p1 = scmp.lt.s32.totalorder %s3300_s24, %s3294_s26 }
 0xfcb   : > { %p3297_p12 = pneg %p3296_p11 }
 0xfcc   : > { %p3303_p2 = por %p3302_p1, %p3301_p13 }
 0xfce   : > { %p3304_p3 = pnand %p3303_p2, %p3297_p12 }
 0xfd0   : > { %3307 = shalt.err (!%p3304_p3)
}
 0xfd1   : > { %s3308_s4 = scalar_lea.hbm %s2642_s21, 32  ;;  %s3312_s18 = scalar_lea.hbm %s4042_s6, 64 }
 0xfd2   : > { %p3309_p4 = scmp.ne.s32.totalorder %s2642_s21, %s3308_s4  ;;  %p3313_p7 = scmp.lt.s32.totalorder %s2642_s21, %s4042_s6 }
 0xfd3   : > { %p3314_p9 = scmp.lt.s32.totalorder %s3312_s18, %s3308_s4 }
 0xfd4   : > { %p3310_p5 = pnand %p3309_p4, %p3556_p10 }
 0xfd5   : > { %p3315_p11 = por %p3314_p9, %p3313_p7 }
 0xfd6   : > { %p3311_p6 = pneg %p3310_p5 }
 0xfd8   : > { %p3316_p8 = pnand %p3315_p11, %p3311_p6 }
 0xfda   : > { %3319 = shalt.err (!%p3316_p8)
}
 0xfdb   : > { %3167 = dma.vmem_to_hbm [thread:$0]  (%p3556_p10), %s3893_s16, 32, %s2642_s21, %s3903_s28  }
 0xfdc   : > { %s3320_s26 = scalar_lea.vmem %s3896_s29, 256  ;;  %p4043_p13 = scmp.eq.s32.totalorder %s3540_s1, 2 }
 0xfdd   : > { %p3321_p12 = scmp.ne.s32.totalorder %s3896_s29, %s3320_s26  ;;  %p3327_p3 = scmp.lt.s32.totalorder %s3896_s29, %s3896_s29 }
 0xfde   : > { %p3328_p4 = scmp.lt.s32.totalorder %s3320_s26, %s3320_s26 }
 0xfdf   : > { %p3322_p1 = pnand %p3321_p12, %p4043_p13 }
 0xfe0   : > { %p3329_p5 = por %p3328_p4, %p3327_p3 }
 0xfe1   : > { %p3323_p2 = pneg %p3322_p1 }
 0xfe3   : > { %p3330_p6 = pnand %p3329_p5, %p3323_p2 }
 0xfe5   : > { %3333 = shalt.err (!%p3330_p6)
}
 0xfe6   : > { %s3431_s17 = smov 128   ;;  %p4044_p8 = pmov %p4043_p13 }
 0xfe7   : > { %s4045_s30 = sld [smem:[#allocation26_spill]]  ;;  %s4046_s16 = sshll.u32 %s4061_s0, 5 }
 0xfe8   : > { %s4047_s4 = sld [smem:[#allocation28_spill]]  ;;  %s4048_s20 = scalar_lea.vmem [#allocation9], %s3573_s25 }
 0xfe9   : > { %s2660_s18 = sshll.u32 %s4048_s20, 4  ;;  %s3432_s2 = smov [#allocation9]   ;;  %s2661_s18 = int_to_ptr.vmem [resolvable:$true] %s2660_s18 }
 0xfea   : > { %s3344_s26 = scalar_lea.vmem %s2661_s18, 32  ;;  %s3348_s15 = sshll.u32 %s3432_s2, 4  ;;  %s3349_s15 = int_to_ptr.vmem [resolvable:$false] %s3348_s15 }
 0xfeb   : > { %p3345_p7 = scmp.ne.s32.totalorder %s2661_s18, %s3344_s26  ;;  %s3350_s27 = scalar_lea.vmem %s3349_s15, 64 }
 0xfec   : > { %p3351_p12 = scmp.lt.s32.totalorder %s2661_s18, %s3349_s15  ;;  %p3352_p13 = scmp.lt.s32.totalorder %s3350_s27, %s3344_s26 }
 0xfed   : > { %3166 = dma.vmem_to_hbm [thread:$0]  (%p4044_p8), %s3896_s29, 256, %s4045_s30, [#allocation6], %s3431_s17, %s3431_s17, %s3426_s14  }
 0xfee   : > { %s2658_s23 = scalar_lea.hbm %s4047_s4, %s4046_s16  ;;  %p3346_p9 = pnand %p3345_p7, %p3556_p10 }
 0xfef   : > { %p3353_p1 = por %p3352_p13, %p3351_p12 }
 0xff0   : > { %p3347_p11 = pneg %p3346_p9 }
 0xff2   : > { %p3354_p2 = pnand %p3353_p1, %p3347_p11 }
 0xff4   : > { %3357 = shalt.err (!%p3354_p2)
}
 0xff5   : > { %s3358_s14 = scalar_lea.hbm %s2658_s23, 32  ;;  %s3362_s29 = scalar_lea.hbm %s4047_s4, 64 }
 0xff6   : > { %p3359_p3 = scmp.ne.s32.totalorder %s2658_s23, %s3358_s14  ;;  %p3363_p6 = scmp.lt.s32.totalorder %s2658_s23, %s4047_s4 }
 0xff7   : > { %p3364_p8 = scmp.lt.s32.totalorder %s3362_s29, %s3358_s14 }
 0xff8   : > { %p3360_p4 = pnand %p3359_p3, %p3556_p10 }
 0xff9   : > { %p3365_p7 = por %p3364_p8, %p3363_p6 }
 0xffa   : > { %p3361_p5 = pneg %p3360_p4 }
 0xffc   : > { %p3366_p9 = pnand %p3365_p7, %p3361_p5 }
 0xffe   : > { %3369 = shalt.err (!%p3366_p9)
}
 0xfff   : > { %3168 = dma.vmem_to_hbm [thread:$0]  (%p3556_p10), %s2661_s18, 32, %s2658_s23, %s3903_s28  }
0x1000   : > { %p4049_p11 = scmp.eq.s32.totalorder %s3540_s1, 2 }
0x1002   : > { %3389 = dma.done.wait (%p4049_p11), [#allocation6], 256   ;;  %p4050_p12 = pmov %p4049_p11 }
0x1004   : > { %3391 = vsyncadd (%p4050_p12), [#allocation6], 4294967040 }
0x1005 PF: > { %s4051_s2 = sld [smem:[#allocation15_spill]] }
0x100b   : > { %p3182_p13 = scmp.ge.s32.totalorder %s4051_s2, 2  ;;  %s4053_s21 = sadd.s32 4294967294, %s4051_s2  }
0x100c   : > { %s2676_s24 = sand.u32 1, %s4053_s21  }
0x100d   : > { %p3174_p1 = pnand %p3182_p13, %p3563_p0  ;;  %s2677_s20 = scalar_lea.sflag [#allocation8], %s2676_s24 }
0x100f   : > { %p3175_p2 = pneg %p3174_p1 }
0x1011   : > { %3393 = dma.done.wait (%p3175_p2), %s2677_s20, 64  }
0x1012   : > { %3395 = vsyncadd (%p3175_p2), %s2677_s20, 4294967232  ;;  %s4054_s29 = sld [smem:[#allocation16_spill]] }
0x1013   : > { %s4055_s26 = sld [smem:[#allocation13_spill]] }
0x1014   : > { %s4056_s27 = sld [smem:[#allocation14_spill]] }
0x1015   : > { %s4057_s28 = sld [smem:[#allocation19_spill]] }
0x1018   : > { %p34_p10 = scmp.ge.s32.totalorder %s4054_s29, 5  }
0x101a   :  { %36 = sbr.rel (!%p34_p10) target bundleno = 33 (0x21), region = 178 }
0x101f   :  { %2691 = vsyncpa [#allocation6], 1 }
0x1020   :  { %2693 = vsyncpa [#allocation6 + $0x1], 1 }
0x1021   :  { %2694 = vsyncpa [#allocation8], 1 }
0x1022   :  { %2696 = vsyncpa [#allocation8 + $0x1], 1 }

</bundles_post_ra>
